<compile_context>
chip_gen: v5e
topology: v5e:2x2
jax: 0.10.0
libtpu: 0.0.40
codegen_flags: <defaults>
</compile_context>

<pallas_src>
import functools

import jax
import jax.numpy as jnp
from jax import lax
from jax.experimental import pallas as pl
from jax.experimental.pallas import tpu as pltpu

BN_EPS = 1e-5
_INV_SQRT2 = 0.7071067811865476
_VMEM_LIMIT = 32 * 1024 * 1024     # fits v5e/v6e/v7x scoped VMEM with headroom


def _round_up(x, m):
    return ((x + m - 1) // m) * m


# ---------------------------------------------------------------------------
# In-kernel GELU: torch's exact erf formulation, erf via Abramowitz-Stegun
# 7.1.26 (|err| < 1.5e-7).  The divide goes to the EUP via pl.reciprocal.
# ---------------------------------------------------------------------------
def _erf_poly(x):
    a1, a2, a3, a4, a5 = (0.254829592, -0.284496736, 1.421413741,
                          -1.453152027, 1.061405429)
    p = 0.3275911
    ax = jnp.abs(x)
    t = pl.reciprocal(1.0 + p * ax, approx=True)      # EUP slot
    poly = ((((a5 * t + a4) * t + a3) * t + a2) * t + a1) * t
    e = 1.0 - poly * jnp.exp(-ax * ax)
    return jnp.where(x >= 0, e, -e)


def _gelu(y):
    return 0.5 * y * (1.0 + _erf_poly(y * _INV_SQRT2))


# ---------------------------------------------------------------------------
# Kernel 1: conv1 (3x3 stride-2) as a packed matmul + BN(bias) + GELU.
# ---------------------------------------------------------------------------
def _conv1_kernel(x_ref, w_ref, b_ref, o_ref):
    # x_ref: (tm, 4*Kp) bf16 packed patches (4 pixels x Kp features per row)
    # w_ref: (4*Kp, 128) bf16 block-diagonal weights (BN scale folded)
    # b_ref: (1, 128) f32 ; o_ref: (tm, 128) f32 (lane-dense store)
    acc = jnp.dot(x_ref[...], w_ref[...], preferred_element_type=jnp.float32)
    o_ref[...] = _gelu(acc + b_ref[...])


def _packed_mm_bias_gelu(xp, wbig, bp, tm4=2048):
    """gelu(xp @ wbig + bp) over packed rows; 128-lane dense f32 output."""
    M4, Kx = xp.shape
    NL = wbig.shape[1]
    tm = min(tm4, max(16, _round_up(M4, 16)))     # 2048 packed = 8192 pixels
    M4p = _round_up(M4, tm)
    if M4p != M4:
        xp = jnp.pad(xp, ((0, M4p - M4), (0, 0)))
    out = pl.pallas_call(
        _conv1_kernel,
        out_shape=jax.ShapeDtypeStruct((M4p, NL), jnp.float32),
        grid_spec=pltpu.PrefetchScalarGridSpec(
            num_scalar_prefetch=0,
            grid=(M4p // tm,),
            in_specs=[
                pl.BlockSpec((tm, Kx), lambda i: (i, 0)),
                pl.BlockSpec((Kx, NL), lambda i: (0, 0)),
                pl.BlockSpec((1, NL), lambda i: (0, 0)),
            ],
            out_specs=pl.BlockSpec((tm, NL), lambda i: (i, 0)),
        ),
        compiler_params=pltpu.CompilerParams(
            dimension_semantics=("parallel",),
            vmem_limit_bytes=_VMEM_LIMIT),
    )(xp, wbig, bp)
    return out[:M4]


# ---------------------------------------------------------------------------
# Kernel 2: conv2 (3x3 s1 p1) + BN + GELU + conv3 (1x1) + BN + GELU,
# strip-tiled, pixel-packed (4 px x 32 ch = 128 lanes).
# ---------------------------------------------------------------------------
def _conv23_kernel(Wq, Mt, x_ref, w2_ref, b2_ref, w3_ref, b3_ref, o_ref):
    # x_ref : (1, R4, 128) f32 -- whole padded image, pixel-packed, VMEM-resident
    #         across the strip axis (index_map ignores it).
    # w2_ref: (9*128, 128) bf16 block-diag 3x3 weights (BN2 scale folded)
    # w3_ref: (128, 128)   bf16 block-diag 1x1 weights (BN3 scale folded)
    # b2/b3 : (1, 128) f32 ; o_ref: (1, Mt, 128) f32 strip of packed outputs.
    s = pl.program_id(1)
    n = Mt + 2 * Wq                                  # rows incl. 3x3 halo (mult of 8)
    m0 = pl.multiple_of(s * Mt, 8)
    blk = x_ref[0, pl.ds(m0, n + 8), :]              # aligned dynamic-slice load
    a = blk[:n]                                      # aligned view (free)
    a1 = blk[1:n + 1]                                # +1 packed row (= +4 pixels)

    # 9 stencil taps.  kh (row) shifts are aligned sublane offsets kh*Wq; the
    # kw in {1,2} sub-row shifts are pure 32*kw lane shifts (slice + concat
    # along lanes -- the pltpu.roll equivalent) so no unaligned sublane slices.
    taps = []
    for kw in range(3):
        if kw == 0:
            sk = a
        else:
            sh = 32 * kw
            sk = jnp.concatenate([a[:, sh:], a1[:, :sh]], axis=1)
        for kh in range(3):
            taps.append(sk[kh * Wq:kh * Wq + Mt])

    # Single K-dense matmul for the whole 3x3 conv (K = 9*128 = 1152, N = 128).
    xcol = jnp.concatenate(taps, axis=1).astype(jnp.bfloat16)
    acc = jnp.dot(xcol, w2_ref[...], preferred_element_type=jnp.float32)
    y = _gelu(acc + b2_ref[...])                               # conv2 BN + GELU
    z = jnp.dot(y.astype(jnp.bfloat16), w3_ref[...],           # fused 1x1 conv3
                preferred_element_type=jnp.float32)
    o_ref[0, :, :] = _gelu(z + b3_ref[...])                    # conv3 BN + GELU


def _conv23_fused(x_packed, w2big, b2p, w3big, b3p, Wq, Mt, S):
    B, R4, NL = x_packed.shape
    K2 = w2big.shape[0]
    assert NL == 128 and Wq % 8 == 0 and Mt % 8 == 0
    assert R4 >= S * Mt + 2 * Wq + 9
    kernel = functools.partial(_conv23_kernel, Wq, Mt)
    return pl.pallas_call(
        kernel,
        out_shape=jax.ShapeDtypeStruct((B, S * Mt, NL), jnp.float32),
        grid_spec=pltpu.PrefetchScalarGridSpec(
            num_scalar_prefetch=0,
            grid=(B, S),
            in_specs=[
                pl.BlockSpec((1, R4, NL), lambda b, s: (b, 0, 0)),
                pl.BlockSpec((K2, NL), lambda b, s: (0, 0)),
                pl.BlockSpec((1, NL), lambda b, s: (0, 0)),
                pl.BlockSpec((NL, NL), lambda b, s: (0, 0)),
                pl.BlockSpec((1, NL), lambda b, s: (0, 0)),
            ],
            out_specs=pl.BlockSpec((1, Mt, NL), lambda b, s: (b, s, 0)),
        ),
        compiler_params=pltpu.CompilerParams(
            dimension_semantics=("parallel", "parallel"),
            vmem_limit_bytes=_VMEM_LIMIT),
    )(x_packed, w2big, b2p, w3big, b3p)


# ---------------------------------------------------------------------------
# Wrapper glue
# ---------------------------------------------------------------------------
def _bn_fold(gamma, beta, mean, var, eps=BN_EPS):
    scale = gamma * lax.rsqrt(var + eps)
    bias = beta - mean * scale
    return scale, bias


def _im2col_s2(x_nhwc, ksize=3, stride=2, pad=1):
    B, H, W, C = x_nhwc.shape
    xp = jnp.pad(x_nhwc, ((0, 0), (pad, pad), (pad, pad), (0, 0)))
    Ho = (H + 2 * pad - ksize) // stride + 1
    Wo = (W + 2 * pad - ksize) // stride + 1
    cols = []
    for kh in range(ksize):
        for kw in range(ksize):
            cols.append(xp[:, kh:kh + stride * Ho:stride,
                           kw:kw + stride * Wo:stride, :])
    cols = jnp.concatenate(cols, axis=-1)                     # (B, Ho, Wo, 9*C)
    return cols.reshape(B * Ho * Wo, ksize * ksize * C), (B, Ho, Wo)


@jax.jit
def cmt_stem_forward(x_nchw, w1, w2, w3, bn1, bn2, bn3):
    """x: (B, Cin, H, W) f32 -> (B, 32, H//2, W//2) f32 (BNs in eval mode)."""
    C = w1.shape[0]
    assert 4 * C == 128, "pixel-packed layout assumes 32 output channels"
    x = jnp.transpose(x_nchw.astype(jnp.float32), (0, 2, 3, 1))   # NCHW -> NHWC
    eye4 = jnp.eye(4, dtype=jnp.float32)

    # ---- conv1 (3x3 s2 p1) + BN + GELU: packed matmul kernel -----------------
    patches, (B, Ho, Wo) = _im2col_s2(x, 3, 2, 1)                 # (M, 9*Cin)
    M, K1 = patches.shape
    Kp = _round_up(K1, 32)
    s1, b1 = _bn_fold(*bn1)
    w1m = jnp.transpose(w1, (2, 3, 1, 0)).reshape(K1, C) * s1[None, :]
    w1m = jnp.pad(w1m, ((0, Kp - K1), (0, 0)))
    w1big = jnp.kron(eye4, w1m).astype(jnp.bfloat16)              # (4*Kp, 128)
    b1p = jnp.tile(b1, 4).reshape(1, 4 * C).astype(jnp.float32)
    patches = jnp.pad(patches, ((0, _round_up(M, 4) - M), (0, Kp - K1)))
    xp4 = patches.astype(jnp.bfloat16).reshape(-1, 4 * Kp)        # packed rows
    y1 = _packed_mm_bias_gelu(xp4, w1big, b1p)                    # (M/4, 128) f32
    y1 = y1.reshape(-1, C)[:M].reshape(B, Ho, Wo, C)

    # ---- conv2 (3x3 s1 p1) + BN + GELU + conv3 (1x1) + BN + GELU -------------
    # TODO(synk): the single pad/flatten pass below (and the conv1 patch
    # extraction above) still run as XLA ops; fusing them into the kernels needs
    # Element-indexed halo DMA and is left for a follow-up.
    Wp = _round_up(Wo + 2, 32)           # aligned padded row width (mult of 32)
    Wq = Wp // 4                         # packed rows per image row (mult of 8)
    L4 = Ho * Wq                         # packed output rows per image
    Mt = min(256, _round_up(L4, 8))      # strip size (packed rows = 4*Mt pixels)
    S = -(-L4 // Mt)                     # number of strips
    R4 = _round_up(S * Mt + 2 * Wq + 16, 8)

    xp = jnp.pad(y1, ((0, 0), (1, 1), (1, Wp - Wo - 1), (0, 0)))  # spatial pad
    x_flat = xp.reshape(B, (Ho + 2) * Wp, C)
    x_flat = jnp.pad(x_flat, ((0, 0), (0, 4 * R4 - (Ho + 2) * Wp), (0, 0)))
    x_packed = x_flat.reshape(B, R4, 4 * C)                       # (B, R4, 128)

    s2, bb2 = _bn_fold(*bn2)
    w2t = (jnp.transpose(w2, (3, 2, 1, 0)) * s2[None, None, None, :]
           ).reshape(9, C, C)                                     # t = kw*3 + kh
    w2big = (eye4[None, :, None, :, None] * w2t[:, None, :, None, :]
             ).reshape(9 * 4 * C, 4 * C).astype(jnp.bfloat16)     # block-diag
    b2p = jnp.tile(bb2, 4).reshape(1, 4 * C).astype(jnp.float32)

    s3, bb3 = _bn_fold(*bn3)
    w3m = jnp.transpose(w3[:, :, 0, 0], (1, 0)) * s3[None, :]
    w3big = jnp.kron(eye4, w3m).astype(jnp.bfloat16)
    b3p = jnp.tile(bb3, 4).reshape(1, 4 * C).astype(jnp.float32)

    out = _conv23_fused(x_packed, w2big, b2p, w3big, b3p, Wq, Mt, S)
    out = out[:, :L4, :].reshape(B, Ho, Wp, C)[:, :, :Wo, :]      # drop pad cols
    return jnp.transpose(out, (0, 3, 1, 2))                       # NHWC -> NCHW


# ---------------------------------------------------------------------------
# Pure-JAX f32 reference (torch semantics) for self-validation.
# ---------------------------------------------------------------------------
def _reference_forward(x, w1, w2, w3, bn1, bn2, bn3):
    def block(y, w, bn, stride, pad):
        y = lax.conv_general_dilated(
            y, w, (stride, stride), [(pad, pad), (pad, pad)],
            dimension_numbers=("NCHW", "OIHW", "NCHW"),
            precision=lax.Precision.HIGHEST)
        g, b, m, v = bn
        scale = (g / jnp.sqrt(v + BN_EPS))[None, :, None, None]
        y = (y - m[None, :, None, None]) * scale + b[None, :, None, None]
        return jax.nn.gelu(y, approximate=False)
    y = block(x, w1, bn1, 2, 1)
    y = block(y, w2, bn2, 1, 1)
    return block(y, w3, bn3, 1, 0)


def _kaiming_normal(key, cout, cin, kh, kw):
    fan_in = cin * kh * kw
    std = (2.0 / fan_in) ** 0.5
    return jax.random.normal(key, (cout, cin, kh, kw), jnp.float32) * std


def _default_bn(c):
    # BatchNorm2d after CMT_Stem.init_weight(), eval mode.
    return (jnp.ones((c,), jnp.float32), jnp.zeros((c,), jnp.float32),
            jnp.zeros((c,), jnp.float32), jnp.ones((c,), jnp.float32))


if __name__ == "__main__":
    key = jax.random.PRNGKey(0)
    B, Cin, H, W = 2, 3, 16, 16
    Cout = 32
    k1, k2, k3, kx = jax.random.split(key, 4)

    w1 = _kaiming_normal(k1, Cout, Cin, 3, 3)
    w2 = _kaiming_normal(k2, Cout, Cout, 3, 3)
    w3 = _kaiming_normal(k3, Cout, Cout, 1, 1)
    x = jax.random.normal(kx, (B, Cin, H, W), jnp.float32)
    bn1, bn2, bn3 = _default_bn(Cout), _default_bn(Cout), _default_bn(Cout)

    out = cmt_stem_forward(x, w1, w2, w3, bn1, bn2, bn3)
    out = jax.block_until_ready(out)
    assert out.shape == (B, Cout, H // 2, W // 2), out.shape
    assert bool(jnp.all(jnp.isfinite(out)))

    # bf16 matmul operands -> bf16-level tolerance vs. the f32 reference.
    ref = _reference_forward(x, w1, w2, w3, bn1, bn2, bn3)
    max_err = float(jnp.max(jnp.abs(out - ref)))
    assert max_err < 0.15, f"max abs error vs f32 reference: {max_err}"
    print("KERNEL_OK")
</pallas_src>

<mosaic_0001>
module attributes {stable_mosaic.version = 11 : i64} {
  func.func @_conv1_kernel(%arg0: i32, %arg1: memref<32x128xbf16, #tpu.memory_space<vmem>>, %arg2: memref<128x128xbf16, #tpu.memory_space<vmem>>, %arg3: memref<1x128xf32, #tpu.memory_space<vmem>>, %arg4: memref<32x128xf32, #tpu.memory_space<vmem>>) attributes {dimension_semantics = [#tpu.dimension_semantics<parallel>], iteration_bounds = array<i64: 1>, scalar_prefetch = 0 : i64, scratch_operands = 0 : i64, tpu.core_type = #tpu.core_type<tc>, window_params = [{transform_indices = @transform_0, window_bounds = array<i64: 32, 128>}, {pipeline_mode = #tpu.pipeline_mode<synchronous>, transform_indices = @transform_1, window_bounds = array<i64: 128, 128>}, {pipeline_mode = #tpu.pipeline_mode<synchronous>, transform_indices = @transform_2, window_bounds = array<i64: 1, 128>}, {transform_indices = @transform_3, window_bounds = array<i64: 32, 128>}]} {
    %c0 = arith.constant 0 : index
    %c0_0 = arith.constant 0 : index
    %0 = vector.load %arg1[%c0, %c0_0] : memref<32x128xbf16, #tpu.memory_space<vmem>>, vector<32x128xbf16>
    %c0_1 = arith.constant 0 : index
    %c0_2 = arith.constant 0 : index
    %1 = vector.load %arg2[%c0_1, %c0_2] : memref<128x128xbf16, #tpu.memory_space<vmem>>, vector<128x128xbf16>
    %cst = arith.constant dense<0.000000e+00> : vector<32x128xf32>
    %2 = tpu.matmul %0, %1, %cst {dimension_numbers = #tpu.dot_dimension_numbers<[1], [0], [0], [1], [0, 0, 1, 1], [], []>} : vector<32x128xbf16>, vector<128x128xbf16>, vector<32x128xf32> -> vector<32x128xf32>
    %c0_3 = arith.constant 0 : index
    %c0_4 = arith.constant 0 : index
    %3 = vector.load %arg3[%c0_3, %c0_4] : memref<1x128xf32, #tpu.memory_space<vmem>>, vector<1x128xf32>
    %4 = vector.broadcast %3 : vector<1x128xf32> to vector<32x128xf32>
    %5 = arith.addf %2, %4 : vector<32x128xf32>
    %cst_5 = arith.constant 5.000000e-01 : f32
    %6 = vector.broadcast %cst_5 : f32 to vector<32x128xf32>
    %7 = arith.mulf %6, %5 : vector<32x128xf32>
    %cst_6 = arith.constant 0.707106769 : f32
    %8 = vector.broadcast %cst_6 : f32 to vector<32x128xf32>
    %9 = arith.mulf %5, %8 : vector<32x128xf32>
    %10 = math.absf %9 : vector<32x128xf32>
    %cst_7 = arith.constant 0.327591091 : f32
    %11 = vector.broadcast %cst_7 : f32 to vector<32x128xf32>
    %12 = arith.mulf %11, %10 : vector<32x128xf32>
    %cst_8 = arith.constant 1.000000e+00 : f32
    %13 = vector.broadcast %cst_8 : f32 to vector<32x128xf32>
    %14 = arith.addf %13, %12 : vector<32x128xf32>
    %15 = tpu.reciprocal %14 {approx = true} : vector<32x128xf32> -> vector<32x128xf32>
    %cst_9 = arith.constant 1.06140542 : f32
    %16 = vector.broadcast %cst_9 : f32 to vector<32x128xf32>
    %17 = arith.mulf %16, %15 : vector<32x128xf32>
    %cst_10 = arith.constant -1.45315206 : f32
    %18 = vector.broadcast %cst_10 : f32 to vector<32x128xf32>
    %19 = arith.addf %17, %18 : vector<32x128xf32>
    %20 = arith.mulf %19, %15 : vector<32x128xf32>
    %cst_11 = arith.constant 1.42141378 : f32
    %21 = vector.broadcast %cst_11 : f32 to vector<32x128xf32>
    %22 = arith.addf %20, %21 : vector<32x128xf32>
    %23 = arith.mulf %22, %15 : vector<32x128xf32>
    %cst_12 = arith.constant -0.284496725 : f32
    %24 = vector.broadcast %cst_12 : f32 to vector<32x128xf32>
    %25 = arith.addf %23, %24 : vector<32x128xf32>
    %26 = arith.mulf %25, %15 : vector<32x128xf32>
    %cst_13 = arith.constant 0.254829586 : f32
    %27 = vector.broadcast %cst_13 : f32 to vector<32x128xf32>
    %28 = arith.addf %26, %27 : vector<32x128xf32>
    %29 = arith.mulf %28, %15 : vector<32x128xf32>
    %cst_14 = arith.constant 0.000000e+00 : f32
    %30 = vector.broadcast %cst_14 : f32 to vector<32x128xf32>
    %31 = arith.subf %30, %10 : vector<32x128xf32>
    %32 = arith.mulf %31, %10 : vector<32x128xf32>
    %33 = math.exp %32 : vector<32x128xf32>
    %34 = arith.mulf %29, %33 : vector<32x128xf32>
    %cst_15 = arith.constant 1.000000e+00 : f32
    %35 = vector.broadcast %cst_15 : f32 to vector<32x128xf32>
    %36 = arith.subf %35, %34 : vector<32x128xf32>
    %cst_16 = arith.constant 0.000000e+00 : f32
    %37 = vector.broadcast %cst_16 : f32 to vector<32x128xf32>
    %38 = arith.cmpf oge, %9, %37 : vector<32x128xf32>
    %cst_17 = arith.constant 0.000000e+00 : f32
    %39 = vector.broadcast %cst_17 : f32 to vector<32x128xf32>
    %40 = arith.subf %39, %36 : vector<32x128xf32>
    %41 = arith.select %38, %36, %40 : vector<32x128xi1>, vector<32x128xf32>
    %cst_18 = arith.constant 1.000000e+00 : f32
    %42 = vector.broadcast %cst_18 : f32 to vector<32x128xf32>
    %43 = arith.addf %42, %41 : vector<32x128xf32>
    %44 = arith.mulf %7, %43 : vector<32x128xf32>
    %c0_19 = arith.constant 0 : index
    %c0_20 = arith.constant 0 : index
    %45 = vector.load %arg4[%c0_19, %c0_20] : memref<32x128xf32, #tpu.memory_space<vmem>>, vector<32x128xf32>
    tpu.vector_store %arg4[%c0_19, %c0_20], %44 {strides = array<i32>} : memref<32x128xf32, #tpu.memory_space<vmem>>, vector<32x128xf32>,
    return
  }
  func.func @transform_0(%arg0: i32) -> (i32, i32) {
    %c0_i32 = arith.constant 0 : i32
    %c0_i32_0 = arith.constant 0 : i32
    return %arg0, %c0_i32 : i32, i32
  }
  func.func @transform_1(%arg0: i32) -> (i32, i32) {
    %c0_i32 = arith.constant 0 : i32
    %c0_i32_0 = arith.constant 0 : i32
    %c0_i32_1 = arith.constant 0 : i32
    return %c0_i32, %c0_i32_0 : i32, i32
  }
  func.func @transform_2(%arg0: i32) -> (i32, i32) {
    %c0_i32 = arith.constant 0 : i32
    %c0_i32_0 = arith.constant 0 : i32
    %c0_i32_1 = arith.constant 0 : i32
    return %c0_i32, %c0_i32_0 : i32, i32
  }
  func.func @transform_3(%arg0: i32) -> (i32, i32) {
    %c0_i32 = arith.constant 0 : i32
    %c0_i32_0 = arith.constant 0 : i32
    return %arg0, %c0_i32 : i32, i32
  }
}

module attributes {stable_mosaic.version = 11 : i64} {
  func.func @_conv23_kernel(%arg0: i32, %arg1: i32, %arg2: memref<1x96x128xf32, #tpu.memory_space<vmem>>, %arg3: memref<1152x128xbf16, #tpu.memory_space<vmem>>, %arg4: memref<1x128xf32, #tpu.memory_space<vmem>>, %arg5: memref<128x128xbf16, #tpu.memory_space<vmem>>, %arg6: memref<1x128xf32, #tpu.memory_space<vmem>>, %arg7: memref<1x64x128xf32, #tpu.memory_space<vmem>>) attributes {dimension_semantics = [#tpu.dimension_semantics<parallel>, #tpu.dimension_semantics<parallel>], iteration_bounds = array<i64: 2, 1>, scalar_prefetch = 0 : i64, scratch_operands = 0 : i64, tpu.core_type = #tpu.core_type<tc>, window_params = [{transform_indices = @transform_0, window_bounds = array<i64: 1, 96, 128>}, {pipeline_mode = #tpu.pipeline_mode<synchronous>, transform_indices = @transform_1, window_bounds = array<i64: 1152, 128>}, {pipeline_mode = #tpu.pipeline_mode<synchronous>, transform_indices = @transform_2, window_bounds = array<i64: 1, 128>}, {pipeline_mode = #tpu.pipeline_mode<synchronous>, transform_indices = @transform_3, window_bounds = array<i64: 128, 128>}, {pipeline_mode = #tpu.pipeline_mode<synchronous>, transform_indices = @transform_4, window_bounds = array<i64: 1, 128>}, {transform_indices = @transform_5, window_bounds = array<i64: 1, 64, 128>}]} {
    %c64_i32 = arith.constant 64 : i32
    %0 = arith.muli %arg1, %c64_i32 : i32
    %1 = tpu.assume_multiple %0, 8 : i32
    %c0 = arith.constant 0 : index
    %2 = arith.index_cast %1 : i32 to index
    %c0_0 = arith.constant 0 : index
    %3 = vector.load %arg2[%c0, %2, %c0_0] : memref<1x96x128xf32, #tpu.memory_space<vmem>>, vector<1x88x128xf32>
    %4 = vector.shape_cast %3 : vector<1x88x128xf32> to vector<88x128xf32>
    %5 = vector.extract_strided_slice %4 {offsets = [0, 0], sizes = [80, 128], strides = [1, 1]} : vector<88x128xf32> to vector<80x128xf32>
    %6 = vector.extract_strided_slice %4 {offsets = [1, 0], sizes = [80, 128], strides = [1, 1]} : vector<88x128xf32> to vector<80x128xf32>
    %7 = vector.extract_strided_slice %5 {offsets = [0, 0], sizes = [64, 128], strides = [1, 1]} : vector<80x128xf32> to vector<64x128xf32>
    %8 = vector.extract_strided_slice %5 {offsets = [8, 0], sizes = [64, 128], strides = [1, 1]} : vector<80x128xf32> to vector<64x128xf32>
    %9 = vector.extract_strided_slice %5 {offsets = [16, 0], sizes = [64, 128], strides = [1, 1]} : vector<80x128xf32> to vector<64x128xf32>
    %10 = vector.extract_strided_slice %5 {offsets = [0, 32], sizes = [80, 96], strides = [1, 1]} : vector<80x128xf32> to vector<80x96xf32>
    %11 = vector.extract_strided_slice %6 {offsets = [0, 0], sizes = [80, 32], strides = [1, 1]} : vector<80x128xf32> to vector<80x32xf32>
    %12 = tpu.concatenate %10, %11 in 1 : vector<80x96xf32>, vector<80x32xf32> -> vector<80x128xf32>
    %13 = vector.extract_strided_slice %12 {offsets = [0, 0], sizes = [64, 128], strides = [1, 1]} : vector<80x128xf32> to vector<64x128xf32>
    %14 = vector.extract_strided_slice %12 {offsets = [8, 0], sizes = [64, 128], strides = [1, 1]} : vector<80x128xf32> to vector<64x128xf32>
    %15 = vector.extract_strided_slice %12 {offsets = [16, 0], sizes = [64, 128], strides = [1, 1]} : vector<80x128xf32> to vector<64x128xf32>
    %16 = vector.extract_strided_slice %5 {offsets = [0, 64], sizes = [80, 64], strides = [1, 1]} : vector<80x128xf32> to vector<80x64xf32>
    %17 = vector.extract_strided_slice %6 {offsets = [0, 0], sizes = [80, 64], strides = [1, 1]} : vector<80x128xf32> to vector<80x64xf32>
    %18 = tpu.concatenate %16, %17 in 1 : vector<80x64xf32>, vector<80x64xf32> -> vector<80x128xf32>
    %19 = vector.extract_strided_slice %18 {offsets = [0, 0], sizes = [64, 128], strides = [1, 1]} : vector<80x128xf32> to vector<64x128xf32>
    %20 = vector.extract_strided_slice %18 {offsets = [8, 0], sizes = [64, 128], strides = [1, 1]} : vector<80x128xf32> to vector<64x128xf32>
    %21 = vector.extract_strided_slice %18 {offsets = [16, 0], sizes = [64, 128], strides = [1, 1]} : vector<80x128xf32> to vector<64x128xf32>
    %22 = tpu.concatenate %7, %8, %9, %13, %14, %15, %19, %20, %21 in 1 : vector<64x128xf32>, vector<64x128xf32>, vector<64x128xf32>, vector<64x128xf32>, vector<64x128xf32>, vector<64x128xf32>, vector<64x128xf32>, vector<64x128xf32>, vector<64x128xf32> -> vector<64x1152xf32>
    %23 = arith.truncf %22 : vector<64x1152xf32> to vector<64x1152xbf16>
    %c0_1 = arith.constant 0 : index
    %c0_2 = arith.constant 0 : index
    %24 = vector.load %arg3[%c0_1, %c0_2] : memref<1152x128xbf16, #tpu.memory_space<vmem>>, vector<1152x128xbf16>
    %cst = arith.constant dense<0.000000e+00> : vector<64x128xf32>
    %25 = tpu.matmul %23, %24, %cst {dimension_numbers = #tpu.dot_dimension_numbers<[1], [0], [0], [1], [0, 0, 1, 1], [], []>} : vector<64x1152xbf16>, vector<1152x128xbf16>, vector<64x128xf32> -> vector<64x128xf32>
    %c0_3 = arith.constant 0 : index
    %c0_4 = arith.constant 0 : index
    %26 = vector.load %arg4[%c0_3, %c0_4] : memref<1x128xf32, #tpu.memory_space<vmem>>, vector<1x128xf32>
    %27 = vector.broadcast %26 : vector<1x128xf32> to vector<64x128xf32>
    %28 = arith.addf %25, %27 : vector<64x128xf32>
    %cst_5 = arith.constant 5.000000e-01 : f32
    %29 = vector.broadcast %cst_5 : f32 to vector<64x128xf32>
    %30 = arith.mulf %29, %28 : vector<64x128xf32>
    %cst_6 = arith.constant 0.707106769 : f32
    %31 = vector.broadcast %cst_6 : f32 to vector<64x128xf32>
    %32 = arith.mulf %28, %31 : vector<64x128xf32>
    %33 = math.absf %32 : vector<64x128xf32>
    %cst_7 = arith.constant 0.327591091 : f32
    %34 = vector.broadcast %cst_7 : f32 to vector<64x128xf32>
    %35 = arith.mulf %34, %33 : vector<64x128xf32>
    %cst_8 = arith.constant 1.000000e+00 : f32
    %36 = vector.broadcast %cst_8 : f32 to vector<64x128xf32>
    %37 = arith.addf %36, %35 : vector<64x128xf32>
    %38 = tpu.reciprocal %37 {approx = true} : vector<64x128xf32> -> vector<64x128xf32>
    %cst_9 = arith.constant 1.06140542 : f32
    %39 = vector.broadcast %cst_9 : f32 to vector<64x128xf32>
    %40 = arith.mulf %39, %38 : vector<64x128xf32>
    %cst_10 = arith.constant -1.45315206 : f32
    %41 = vector.broadcast %cst_10 : f32 to vector<64x128xf32>
    %42 = arith.addf %40, %41 : vector<64x128xf32>
    %43 = arith.mulf %42, %38 : vector<64x128xf32>
    %cst_11 = arith.constant 1.42141378 : f32
    %44 = vector.broadcast %cst_11 : f32 to vector<64x128xf32>
    %45 = arith.addf %43, %44 : vector<64x128xf32>
    %46 = arith.mulf %45, %38 : vector<64x128xf32>
    %cst_12 = arith.constant -0.284496725 : f32
    %47 = vector.broadcast %cst_12 : f32 to vector<64x128xf32>
    %48 = arith.addf %46, %47 : vector<64x128xf32>
    %49 = arith.mulf %48, %38 : vector<64x128xf32>
    %cst_13 = arith.constant 0.254829586 : f32
    %50 = vector.broadcast %cst_13 : f32 to vector<64x128xf32>
    %51 = arith.addf %49, %50 : vector<64x128xf32>
    %52 = arith.mulf %51, %38 : vector<64x128xf32>
    %cst_14 = arith.constant 0.000000e+00 : f32
    %53 = vector.broadcast %cst_14 : f32 to vector<64x128xf32>
    %54 = arith.subf %53, %33 : vector<64x128xf32>
    %55 = arith.mulf %54, %33 : vector<64x128xf32>
    %56 = math.exp %55 : vector<64x128xf32>
    %57 = arith.mulf %52, %56 : vector<64x128xf32>
    %cst_15 = arith.constant 1.000000e+00 : f32
    %58 = vector.broadcast %cst_15 : f32 to vector<64x128xf32>
    %59 = arith.subf %58, %57 : vector<64x128xf32>
    %cst_16 = arith.constant 0.000000e+00 : f32
    %60 = vector.broadcast %cst_16 : f32 to vector<64x128xf32>
    %61 = arith.cmpf oge, %32, %60 : vector<64x128xf32>
    %cst_17 = arith.constant 0.000000e+00 : f32
    %62 = vector.broadcast %cst_17 : f32 to vector<64x128xf32>
    %63 = arith.subf %62, %59 : vector<64x128xf32>
    %64 = arith.select %61, %59, %63 : vector<64x128xi1>, vector<64x128xf32>
    %cst_18 = arith.constant 1.000000e+00 : f32
    %65 = vector.broadcast %cst_18 : f32 to vector<64x128xf32>
    %66 = arith.addf %65, %64 : vector<64x128xf32>
    %67 = arith.mulf %30, %66 : vector<64x128xf32>
    %68 = arith.truncf %67 : vector<64x128xf32> to vector<64x128xbf16>
    %c0_19 = arith.constant 0 : index
    %c0_20 = arith.constant 0 : index
    %69 = vector.load %arg5[%c0_19, %c0_20] : memref<128x128xbf16, #tpu.memory_space<vmem>>, vector<128x128xbf16>
    %cst_21 = arith.constant dense<0.000000e+00> : vector<64x128xf32>
    %70 = tpu.matmul %68, %69, %cst_21 {dimension_numbers = #tpu.dot_dimension_numbers<[1], [0], [0], [1], [0, 0, 1, 1], [], []>} : vector<64x128xbf16>, vector<128x128xbf16>, vector<64x128xf32> -> vector<64x128xf32>
    %c0_22 = arith.constant 0 : index
    %c0_23 = arith.constant 0 : index
    %71 = vector.load %arg6[%c0_22, %c0_23] : memref<1x128xf32, #tpu.memory_space<vmem>>, vector<1x128xf32>
    %72 = vector.broadcast %71 : vector<1x128xf32> to vector<64x128xf32>
    %73 = arith.addf %70, %72 : vector<64x128xf32>
    %cst_24 = arith.constant 5.000000e-01 : f32
    %74 = vector.broadcast %cst_24 : f32 to vector<64x128xf32>
    %75 = arith.mulf %74, %73 : vector<64x128xf32>
    %cst_25 = arith.constant 0.707106769 : f32
    %76 = vector.broadcast %cst_25 : f32 to vector<64x128xf32>
    %77 = arith.mulf %73, %76 : vector<64x128xf32>
    %78 = math.absf %77 : vector<64x128xf32>
    %cst_26 = arith.constant 0.327591091 : f32
    %79 = vector.broadcast %cst_26 : f32 to vector<64x128xf32>
    %80 = arith.mulf %79, %78 : vector<64x128xf32>
    %cst_27 = arith.constant 1.000000e+00 : f32
    %81 = vector.broadcast %cst_27 : f32 to vector<64x128xf32>
    %82 = arith.addf %81, %80 : vector<64x128xf32>
    %83 = tpu.reciprocal %82 {approx = true} : vector<64x128xf32> -> vector<64x128xf32>
    %cst_28 = arith.constant 1.06140542 : f32
    %84 = vector.broadcast %cst_28 : f32 to vector<64x128xf32>
    %85 = arith.mulf %84, %83 : vector<64x128xf32>
    %cst_29 = arith.constant -1.45315206 : f32
    %86 = vector.broadcast %cst_29 : f32 to vector<64x128xf32>
    %87 = arith.addf %85, %86 : vector<64x128xf32>
    %88 = arith.mulf %87, %83 : vector<64x128xf32>
    %cst_30 = arith.constant 1.42141378 : f32
    %89 = vector.broadcast %cst_30 : f32 to vector<64x128xf32>
    %90 = arith.addf %88, %89 : vector<64x128xf32>
    %91 = arith.mulf %90, %83 : vector<64x128xf32>
    %cst_31 = arith.constant -0.284496725 : f32
    %92 = vector.broadcast %cst_31 : f32 to vector<64x128xf32>
    %93 = arith.addf %91, %92 : vector<64x128xf32>
    %94 = arith.mulf %93, %83 : vector<64x128xf32>
    %cst_32 = arith.constant 0.254829586 : f32
    %95 = vector.broadcast %cst_32 : f32 to vector<64x128xf32>
    %96 = arith.addf %94, %95 : vector<64x128xf32>
    %97 = arith.mulf %96, %83 : vector<64x128xf32>
    %cst_33 = arith.constant 0.000000e+00 : f32
    %98 = vector.broadcast %cst_33 : f32 to vector<64x128xf32>
    %99 = arith.subf %98, %78 : vector<64x128xf32>
    %100 = arith.mulf %99, %78 : vector<64x128xf32>
    %101 = math.exp %100 : vector<64x128xf32>
    %102 = arith.mulf %97, %101 : vector<64x128xf32>
    %cst_34 = arith.constant 1.000000e+00 : f32
    %103 = vector.broadcast %cst_34 : f32 to vector<64x128xf32>
    %104 = arith.subf %103, %102 : vector<64x128xf32>
    %cst_35 = arith.constant 0.000000e+00 : f32
    %105 = vector.broadcast %cst_35 : f32 to vector<64x128xf32>
    %106 = arith.cmpf oge, %77, %105 : vector<64x128xf32>
    %cst_36 = arith.constant 0.000000e+00 : f32
    %107 = vector.broadcast %cst_36 : f32 to vector<64x128xf32>
    %108 = arith.subf %107, %104 : vector<64x128xf32>
    %109 = arith.select %106, %104, %108 : vector<64x128xi1>, vector<64x128xf32>
    %cst_37 = arith.constant 1.000000e+00 : f32
    %110 = vector.broadcast %cst_37 : f32 to vector<64x128xf32>
    %111 = arith.addf %110, %109 : vector<64x128xf32>
    %112 = arith.mulf %75, %111 : vector<64x128xf32>
    %c0_38 = arith.constant 0 : index
    %c0_39 = arith.constant 0 : index
    %c0_40 = arith.constant 0 : index
    %113 = vector.load %arg7[%c0_38, %c0_39, %c0_40] : memref<1x64x128xf32, #tpu.memory_space<vmem>>, vector<1x64x128xf32>
    %114 = vector.shape_cast %113 : vector<1x64x128xf32> to vector<64x128xf32>
    %115 = vector.shape_cast %112 : vector<64x128xf32> to vector<1x64x128xf32>
    tpu.vector_store %arg7[%c0_38, %c0_39, %c0_40], %115 {strides = array<i32>} : memref<1x64x128xf32, #tpu.memory_space<vmem>>, vector<1x64x128xf32>,
    return
  }
  func.func @transform_0(%arg0: i32, %arg1: i32) -> (i32, i32, i32) {
    %c0_i32 = arith.constant 0 : i32
    %c0_i32_0 = arith.constant 0 : i32
    %c0_i32_1 = arith.constant 0 : i32
    return %arg0, %c0_i32, %c0_i32_0 : i32, i32, i32
  }
  func.func @transform_1(%arg0: i32, %arg1: i32) -> (i32, i32) {
    %c0_i32 = arith.constant 0 : i32
    %c0_i32_0 = arith.constant 0 : i32
    %c0_i32_1 = arith.constant 0 : i32
    return %c0_i32, %c0_i32_0 : i32, i32
  }
  func.func @transform_2(%arg0: i32, %arg1: i32) -> (i32, i32) {
    %c0_i32 = arith.constant 0 : i32
    %c0_i32_0 = arith.constant 0 : i32
    %c0_i32_1 = arith.constant 0 : i32
    return %c0_i32, %c0_i32_0 : i32, i32
  }
  func.func @transform_3(%arg0: i32, %arg1: i32) -> (i32, i32) {
    %c0_i32 = arith.constant 0 : i32
    %c0_i32_0 = arith.constant 0 : i32
    %c0_i32_1 = arith.constant 0 : i32
    return %c0_i32, %c0_i32_0 : i32, i32
  }
  func.func @transform_4(%arg0: i32, %arg1: i32) -> (i32, i32) {
    %c0_i32 = arith.constant 0 : i32
    %c0_i32_0 = arith.constant 0 : i32
    %c0_i32_1 = arith.constant 0 : i32
    return %c0_i32, %c0_i32_0 : i32, i32
  }
  func.func @transform_5(%arg0: i32, %arg1: i32) -> (i32, i32, i32) {
    %c0_i32 = arith.constant 0 : i32
    %c0_i32_0 = arith.constant 0 : i32
    return %arg0, %arg1, %c0_i32 : i32, i32, i32
  }
}

</mosaic_0001>

<bundles_post_ra>
// kernel: tile.28
= control target key start
LH: loop header
LB: loop body
LE: loop exit
PB: predicated region body
PF: predicated region fallthrough
CT: control target
= control target key end

     0   :  { %s22_s0 = inlined_call_operand.vmem [shape: f32[32], index: 0, kind: input, shape index: {}]   ;;  %s23_s1 = inlined_call_operand.vmem [shape: f32[4,32], index: 1, kind: output, shape index: {}]  }
   0x1   :  { %v4_v0 = vld [vmem:[%s22_s0] ss:$0 sm:$0xff] }
   0x2   :  { %5 = vst [vmem:[%s23_s1] sm:$0xf] %v4_v0 }

// kernel: tile.29
= control target key start
LH: loop header
LB: loop body
LE: loop exit
PB: predicated region body
PF: predicated region fallthrough
CT: control target
= control target key end

     0   :  { %s37_s8 = smov 32   ;;  %s38_s9 = smov 64   ;;  %vm7_vm0 = vcmask 261120   ;;  %vm13_vm1 = vcmask 1048320   ;;  %vm19_vm2 = vcmask 785920   ;;  %vm25_vm3 = vcmask 523520   ;;  %s55_s0 = inlined_call_operand.vmem [shape: f32[4,32], index: 0, kind: input, shape index: {}]   ;;  %s56_s1 = inlined_call_operand.vmem [shape: f32[1,128], index: 1, kind: output, shape index: {}]  }
   0x1   :  { %v4_v0 = vld [vmem:[%s55_s0] sm:$0xf]  ;;  %s36_s0 = smov 96  }
   0x2   :  { %5 = vst [vmem:[#allocation1] sm:$0xf] %v4_v0 }
   0x9   :  { %v10_v1 = vld [vmem:[#allocation1 + $0x3] sm:$0x1]   ;;  %v22_v2 = vld [vmem:[#allocation1 + $0x1] sm:$0x1]   ;;  %v16_v3 = vld [vmem:[#allocation1 + $0x2] sm:$0x1]  }
   0xa   :  { %11 = vrot.lane.b32.xlu0 %v10_v1, %s36_s0  ;;  %23 = vrot.lane.b32.xlu1 %v22_v2, %s37_s8  ;;  %v6_v4 = vld [vmem:[#allocation1] sm:$0x1]  }
   0xb   :  { %8 = vst.msk [vmem:[#allocation0] sm:$0x1] %vm7_vm0, %v6_v4  }
  0x12   :  { %17 = vrot.lane.b32.xlu0 %v16_v3, %s38_s9 }
  0x7c   :  { %v12_v5 = vpop.permute.xlu0 %11   ;;  %v24_v6 = vpop.permute.xlu1 %23  }
  0x7d   :  { %14 = vst.msk [vmem:[#allocation0] sm:$0x1] %vm13_vm1, %v12_v5  }
  0x84   :  { %v18_v7 = vpop.permute.xlu0 %17  }
  0x85   :  { %20 = vst.msk [vmem:[#allocation0] sm:$0x1] %vm19_vm2, %v18_v7  }
  0x86   :  { %26 = vst.msk [vmem:[#allocation0] sm:$0x1] %vm25_vm3, %v24_v6  }
  0x8d   :  { %v29_v8 = vld [vmem:[#allocation0] sm:$0x1] }
  0x8e   :  { %32 = vst [vmem:[%s56_s1] sm:$0x1] %v29_v8 }

// kernel: cmt_stem_forward.2
= control target key start
LH: loop header
LB: loop body
LE: loop exit
PB: predicated region body
PF: predicated region fallthrough
CT: control target
= control target key end

     0   :  { %s401_s1 = inlined_call_operand.vmem [shape: bf16[128,128], index: 1, kind: input, shape index: {}]   ;;  %s402_s2 = inlined_call_operand.vmem [shape: f32[1,128], index: 2, kind: input, shape index: {}]   ;;  %s403_s0 = inlined_call_operand.vmem [shape: bf16[32,128], index: 0, kind: input, shape index: {}]   ;;  %s404_s3 = inlined_call_operand.vmem [shape: f32[32,128], index: 3, kind: output, shape index: {}]  }
   0x1   :  { %v278_v0 = vld [vmem:[%s401_s1 + $0x38] sm:$0xff]  ;;  %v277_v1 = vld [vmem:[%s401_s1 + $0x30] sm:$0xff]  ;;  %v276_v2 = vld [vmem:[%s401_s1 + $0x28] sm:$0xff] }
   0x2   :  { %98 = vmatpush.bf16.msra.mxu0 %v278_v0  ;;  %279 = vmatpush.bf16.msra.mxu1 %v278_v0  ;;  %v275_v3 = vld [vmem:[%s401_s1 + $0x20] sm:$0xff]  ;;  %v274_v4 = vld [vmem:[%s401_s1 + $0x18] sm:$0xff]  ;;  %v273_v5 = vld [vmem:[%s401_s1 + $0x10] sm:$0xff] }
   0x3   :  { %v272_v6 = vld [vmem:[%s401_s1 + $0x8] sm:$0xff]  ;;  %v271_v7 = vld [vmem:[%s401_s1] sm:$0xff] }
   0x4   :  { %v269_v8 = vld [vmem:[%s403_s0] sm:$0xff]  ;;  %v270_v9 = vld [vmem:[%s403_s0 + $0x8] sm:$0xff] }
   0x5   :  { %v287_v10 = vld [vmem:[%s402_s2] ss:$0 sm:$0xff] }
   0x6   :  { %99 = vmatpush.bf16.msra.mxu0 %v277_v1  ;;  %280 = vmatpush.bf16.msra.mxu1 %v277_v1 }
   0xa   :  { %100 = vmatpush.bf16.msra.mxu0 %v276_v2  ;;  %281 = vmatpush.bf16.msra.mxu1 %v276_v2 }
   0xe   :  { %101 = vmatpush.bf16.msra.mxu0 %v275_v3  ;;  %282 = vmatpush.bf16.msra.mxu1 %v275_v3 }
  0x12   :  { %102 = vmatpush.bf16.msra.mxu0 %v274_v4  ;;  %283 = vmatpush.bf16.msra.mxu1 %v274_v4 }
  0x16   :  { %103 = vmatpush.bf16.msra.mxu0 %v273_v5  ;;  %284 = vmatpush.bf16.msra.mxu1 %v273_v5 }
  0x1a   :  { %104 = vmatpush.bf16.msra.mxu0 %v272_v6  ;;  %285 = vmatpush.bf16.msra.mxu1 %v272_v6 }
  0x1e   :  { %105 = vmatpush.bf16.msra.mxu0 %v271_v7  ;;  %286 = vmatpush.bf16.msra.mxu1 %v271_v7 }
  0x21   :  { %106 = vmatmul.bf16.vlgmr.msra.gmra.mxu0 %v269_v8  ;;  %111 = vmatmul.bf16.vlgmr.msra.gmra.mxu1 %v270_v9 }
  0x9e   :  { %v107_v11 = vpop.f32.mrf.mxu0  ;;  %v112_v12 = vpop.f32.mrf.mxu1 }
  0x9f   :  { %v357_v13 = vadd.f32 %v287_v10, %v107_v11  ;;  %v359_v14 = vadd.f32 %v287_v10, %v112_v12 }
  0xa1   :  { %v362_v15 = vmul.f32 0.70710677, %v357_v13  ;;  %v365_v16 = vmul.f32 0.70710677, %v359_v14 }
  0xa3   :  { %v125_v17 = vand.u32 2147483647, %v362_v15  ;;  %v127_v18 = vand.u32 2147483647, %v365_v16  ;;  %vm201_vm0 = vcmp.ge.f32.partialorder %v362_v15, 0.0  ;;  %vm203_vm1 = vcmp.ge.f32.partialorder %v365_v16, 0.0 }
  0xa5   :  { %v129_v19 = vmul.f32 0.3275911, %v125_v17  ;;  %v131_v20 = vmul.f32 0.3275911, %v127_v18  ;;  %v177_v33 = vsub.f32 0.0, %v125_v17  ;;  %v179_v37 = vsub.f32 0.0, %v127_v18 }
  0xa6   :  { %v109_v21 = vpop.f32.mrf.mxu0  ;;  %v114_v22 = vpop.f32.mrf.mxu1 }
  0xa7   :  { %v133_v23 = vadd.f32 1.0, %v129_v19  ;;  %v135_v24 = vadd.f32 1.0, %v131_v20  ;;  %v369_v25 = vadd.f32 %v287_v10, %v109_v21  ;;  %v371_v26 = vadd.f32 %v287_v10, %v114_v22 }
  0xa8   :  { %v181_v42 = vmul.f32 %v177_v33, %v125_v17  ;;  %v183_v45 = vmul.f32 %v179_v37, %v127_v18 }
  0xa9   :  { %288 = vrcp.f32 %v133_v23  ;;  %v374_v27 = vmul.f32 0.70710677, %v369_v25  ;;  %v377_v28 = vmul.f32 0.70710677, %v371_v26 }
  0xaa   :  { %290 = vrcp.f32 %v135_v24  ;;  %v185_v48 = vmul.f32 1.442695, %v181_v42  ;;  %v189_v52 = vmul.f32 1.442695, %v183_v45 }
  0xab   :  { %v126_v29 = vand.u32 2147483647, %v374_v27  ;;  %v128_v30 = vand.u32 2147483647, %v377_v28  ;;  %vm202_vm2 = vcmp.ge.f32.partialorder %v374_v27, 0.0  ;;  %vm204_vm3 = vcmp.ge.f32.partialorder %v377_v28, 0.0 }
  0xad   :  { %v130_v31 = vmul.f32 0.3275911, %v126_v29  ;;  %v132_v34 = vmul.f32 0.3275911, %v128_v30  ;;  %v178_v53 = vsub.f32 0.0, %v126_v29  ;;  %v180_v57 = vsub.f32 0.0, %v128_v30 }
  0xaf   :  { %v289_v32 = vpop.eup %288  ;;  %v134_v38 = vadd.f32 1.0, %v130_v31  ;;  %v136_v40 = vadd.f32 1.0, %v132_v34  ;;  %v182_v63 = vmul.f32 %v178_v53, %v126_v29  ;;  %v184_v3 = vmul.f32 %v180_v57, %v128_v30 }
  0xb0   :  { %v291_v35 = vpop.eup %290  ;;  %v141_v36 = vmul.f32 1.0614054, %v289_v32 }
  0xb1   :  { %v143_v39 = vmul.f32 1.0614054, %v291_v35  ;;  %292 = vrcp.f32 %v134_v38  ;;  %v187_v9 = vmul.f32 1.442695, %v182_v63  ;;  %v191_v18 = vmul.f32 1.442695, %v184_v3 }
  0xb2   :  { %v145_v41 = vadd.f32 -1.4531521, %v141_v36  ;;  %294 = vrcp.f32 %v136_v40  ;;  %v117_v38 = vmul.f32 0.5, %v357_v13 }
  0xb3   :  { %v147_v43 = vadd.f32 -1.4531521, %v143_v39  ;;  %296 = vpow2.f32 %v185_v48 }
  0xb4   :  { %v149_v44 = vmul.f32 %v289_v32, %v145_v41  ;;  %298 = vpow2.f32 %v189_v52  ;;  %v118_v52 = vmul.f32 0.5, %v369_v25 }
  0xb5   :  { %v151_v46 = vmul.f32 %v291_v35, %v147_v43  ;;  %300 = vpow2.f32 %v187_v9  ;;  %v119_v43 = vmul.f32 0.5, %v359_v14 }
  0xb6   :  { %v153_v47 = vadd.f32 1.4214138, %v149_v44  ;;  %302 = vpow2.f32 %v191_v18 }
  0xb7   :  { %v155_v49 = vadd.f32 1.4214138, %v151_v46  ;;  %v293_v50 = vpop.eup %292 }
  0xb8   :  { %v157_v51 = vmul.f32 %v289_v32, %v153_v47  ;;  %v295_v54 = vpop.eup %294  ;;  %v142_v56 = vmul.f32 1.0614054, %v293_v50 }
  0xb9   :  { %v159_v55 = vmul.f32 %v291_v35, %v155_v49  ;;  %v144_v59 = vmul.f32 1.0614054, %v295_v54  ;;  %v297_v11 = vpop.eup %296 }
  0xba   :  { %v161_v58 = vadd.f32 -0.28449672, %v157_v51  ;;  %v146_v61 = vadd.f32 -1.4531521, %v142_v56  ;;  %v299_v19 = vpop.eup %298 }
  0xbb   :  { %v163_v60 = vadd.f32 -0.28449672, %v159_v55  ;;  %v148_v0 = vadd.f32 -1.4531521, %v144_v59  ;;  %v301_v42 = vpop.eup %300  ;;  %v120_v55 = vmul.f32 0.5, %v371_v26 }
  0xbc   :  { %v165_v62 = vmul.f32 %v289_v32, %v161_v58  ;;  %v150_v2 = vmul.f32 %v293_v50, %v146_v61  ;;  %v303_v46 = vpop.eup %302 }
  0xbd   :  { %v167_v1 = vmul.f32 %v291_v35, %v163_v60  ;;  %v152_v5 = vmul.f32 %v295_v54, %v148_v0 }
  0xbe   :  { %v169_v4 = vadd.f32 0.2548296, %v165_v62  ;;  %v154_v7 = vadd.f32 1.4214138, %v150_v2 }
  0xbf   :  { %v171_v6 = vadd.f32 0.2548296, %v167_v1  ;;  %v156_v10 = vadd.f32 1.4214138, %v152_v5 }
  0xc0   :  { %v173_v8 = vmul.f32 %v289_v32, %v169_v4  ;;  %v158_v17 = vmul.f32 %v293_v50, %v154_v7 }
  0xc1   :  { %v175_v12 = vmul.f32 %v291_v35, %v171_v6  ;;  %v160_v21 = vmul.f32 %v295_v54, %v156_v10 }
  0xc2   :  { %v193_v20 = vmul.f32 %v297_v11, %v173_v8  ;;  %v162_v23 = vadd.f32 -0.28449672, %v158_v17 }
  0xc3   :  { %v195_v22 = vmul.f32 %v299_v19, %v175_v12  ;;  %v164_v29 = vadd.f32 -0.28449672, %v160_v21 }
  0xc4   :  { %v197_v24 = vsub.f32 1.0, %v193_v20  ;;  %v166_v31 = vmul.f32 %v293_v50, %v162_v23 }
  0xc5   :  { %v199_v30 = vsub.f32 1.0, %v195_v22  ;;  %v168_v34 = vmul.f32 %v295_v54, %v164_v29 }
  0xc6   :  { %v205_v33 = vsub.f32 0.0, %v197_v24  ;;  %v170_v36 = vadd.f32 0.2548296, %v166_v31 }
  0xc7   :  { %v207_v32 = vsub.f32 0.0, %v199_v30  ;;  %v172_v37 = vadd.f32 0.2548296, %v168_v34 }
  0xc8   :  { %v209_v35 = vsel %vm201_vm0, %v197_v24, %v205_v33  ;;  %v174_v41 = vmul.f32 %v293_v50, %v170_v36 }
  0xc9   :  { %v213_v39 = vadd.f32 1.0, %v209_v35  ;;  %v211_v40 = vsel %vm203_vm1, %v199_v30, %v207_v32  ;;  %v176_v45 = vmul.f32 %v295_v54, %v172_v37 }
  0xca   :  { %v215_v44 = vadd.f32 1.0, %v211_v40  ;;  %v194_v48 = vmul.f32 %v301_v42, %v174_v41 }
  0xcb   :  { %v217_v47 = vmul.f32 %v213_v39, %v117_v38  ;;  %v196_v49 = vmul.f32 %v303_v46, %v176_v45 }
  0xcc   :  { %v219_v15 = vmul.f32 %v215_v44, %v119_v43  ;;  %v198_v16 = vsub.f32 1.0, %v194_v48 }
  0xcd   :  { %221 = vst [vmem:[%s404_s3] sm:$0xff] %v217_v47  ;;  %v200_v13 = vsub.f32 1.0, %v196_v49 }
  0xce   :  { %223 = vst [vmem:[%s404_s3 + $0x10] sm:$0xff] %v219_v15  ;;  %v206_v50 = vsub.f32 0.0, %v198_v16 }
  0xcf   :  { %v208_v14 = vsub.f32 0.0, %v200_v13 }
  0xd0   :  { %v210_v51 = vsel %vm202_vm2, %v198_v16, %v206_v50 }
  0xd1   :  { %v214_v53 = vadd.f32 1.0, %v210_v51  ;;  %v212_v54 = vsel %vm204_vm3, %v200_v13, %v208_v14 }
  0xd2   :  { %v216_v56 = vadd.f32 1.0, %v212_v54 }
  0xd3   :  { %v218_v57 = vmul.f32 %v214_v53, %v118_v52 }
  0xd4   :  { %v220_v58 = vmul.f32 %v216_v56, %v120_v55 }
  0xd5   :  { %222 = vst [vmem:[%s404_s3 + $0x8] sm:$0xff] %v218_v57 }
  0xd6   :  { %224 = vst [vmem:[%s404_s3 + $0x18] sm:$0xff] %v220_v58 }

// kernel: cmt_stem_forward.3
= control target key start
LH: loop header
LB: loop body
LE: loop exit
PB: predicated region body
PF: predicated region fallthrough
CT: control target
= control target key end

     0   :  { %s2588_s18 = smov 0   ;;  %s2590_s19 = smov 0   ;;  %s3272_s0 = inlined_call_operand.vmem [shape: f32[2,96,128], index: 0, kind: input, shape index: {}]   ;;  %s3273_s1 = inlined_call_operand.vmem [shape: bf16[1152,128], index: 1, kind: input, shape index: {}]   ;;  %s3274_s2 = inlined_call_operand.vmem [shape: f32[1,128], index: 2, kind: input, shape index: {}]   ;;  %s3275_s3 = inlined_call_operand.vmem [shape: bf16[128,128], index: 3, kind: input, shape index: {}]   ;;  %s3276_s4 = inlined_call_operand.vmem [shape: f32[1,128], index: 4, kind: input, shape index: {}]   ;;  %s3277_s5 = inlined_call_operand.vmem [shape: f32[2,64,128], index: 5, kind: output, shape index: {}]  }
   0x1   :  { %s2592_s20 = smov 0  }
   0x2 LB: > { %s27_s21 = sadd.s32 1, %s2550_s19  ;;  %p1916_p0 = scmp.ge.s32.totalorder %s2554_s20, 1  ;;  %s2554_s20 = sphi %s2592_s20, %s15_s20   ;;  %s2550_s19 = sphi %s2590_s19, %s3279_s19   ;;  %s2546_s18 = sphi %s2588_s18, %s3278_s18  }
   0x3   : > { %p29_p1 = scmp.ge.s32.totalorder %s27_s21, 2  ;;  %p201_p2 = scmp.lt.s32.totalorder %s2554_s20, 3 }
   0x5   : > { %s3281_s21 = smov (%p29_p1, %s27_s21), 0  ;;  %p202_p3 = pnand %p1916_p0, %p201_p2 }
   0x6   : > { %p233_p4 = scmp.lt.s32.totalorder (!%p202_p3), %s2546_s18, 1  ;;  %s2556_s7 = smov (!%p202_p3), 96  }
   0x7   : > { %205 = sbr.rel (%p202_p3) target bundleno = 630 (0x276), region = 40  ;;  %s2557_s6 = smov (!%p202_p3), 64  }
   0xc   : > { %v2250_v0 = vld [vmem:[%s3273_s1 + $0x38] sm:$0xff]  ;;  %v2249_v1 = vld [vmem:[%s3273_s1 + $0x30] sm:$0xff]  ;;  %s3283_s18 = smov (!%p233_p4, %s2546_s18), 1  ;;  %v2248_v2 = vld [vmem:[%s3273_s1 + $0x28] sm:$0xff]  ;;  %vm302_vm0 = vcmask 1046528   ;;  %vm354_vm1 = vcmask 785408  }
   0xd   : > { %2323 = vmatpush.bf16.msra.mxu2 %v2250_v0  ;;  %1043 = vmatpush.bf16.msra.mxu0 %v2250_v0  ;;  %s2339_s26 = smul.u32 96, %s3283_s18  ;;  %v2247_v13 = vld [vmem:[%s3273_s1 + $0x20] sm:$0xff]  ;;  %v2246_v22 = vld [vmem:[%s3273_s1 + $0x18] sm:$0xff]  ;;  %v2245_v30 = vld [vmem:[%s3273_s1 + $0x10] sm:$0xff]  ;;  %vm425_vm2 = vcmask 523264  }
   0xe   : > { %v2244_v35 = vld [vmem:[%s3273_s1 + $0x8] sm:$0xff]  ;;  %v2243_v40 = vld [vmem:[%s3273_s1] sm:$0xff]  ;;  %v2266_v41 = vld [vmem:[%s3273_s1 + $0xb8] sm:$0xff] }
   0xf   : > { %s2618_s29 = scalar_lea.vmem %s3272_s0, %s2339_s26  ;;  %v2258_v43 = vld [vmem:[%s3273_s1 + $0x78] sm:$0xff]  ;;  %v2265_v45 = vld [vmem:[%s3273_s1 + $0xb0] sm:$0xff]  ;;  %v2264_v49 = vld [vmem:[%s3273_s1 + $0xa8] sm:$0xff] }
  0x10   : > { %v2624_v3 = vld [vmem:[%s2618_s29] sm:$0xff]  ;;  %v2627_v4 = vld [vmem:[%s2618_s29 + $0x8] sm:$0xff]  ;;  %v2630_v5 = vld [vmem:[%s2618_s29 + $0x10] sm:$0xff]  ;;  %2331 = vmatpush.bf16.msra.mxu3 %v2258_v43  ;;  %1072 = vmatpush.bf16.msra.mxu1 %v2258_v43 }
  0x11   : > { %2324 = vmatpush.bf16.msra.mxu2 %v2249_v1  ;;  %1044 = vmatpush.bf16.msra.mxu0 %v2249_v1  ;;  %v2634_v6 = vpack.i.bf16 %v2627_v4, %v2624_v3  ;;  %v2637_v7 = vld [vmem:[%s2618_s29 + $0x18] sm:$0xff]  ;;  %v306_v8 = vrot.slane %v2630_v5, 1  ;;  %v303_v9 = vrot.slane %v2624_v3, 1  ;;  %v304_v10 = vrot.slane %v2627_v4, 1  ;;  %v2643_v11 = vld [vmem:[%s2618_s29 + $0x20] sm:$0xff]  ;;  %v2662_v20 = vld [vmem:[%s2618_s29 + $0x30] sm:$0xff] }
  0x12   : > { %v308_v12 = vrot.slane %v2637_v7, 1  ;;  %v310_v17 = vrot.slane %v2643_v11, 1  ;;  %v2659_v19 = vld [vmem:[%s2618_s29 + $0x38] sm:$0xff]  ;;  %v314_v25 = vrot.slane %v2662_v20, 1  ;;  %v2673_v26 = vld [vmem:[%s2618_s29 + $0x40] sm:$0xff]  ;;  %v2676_v27 = vld [vmem:[%s2618_s29 + $0x28] sm:$0xff] }
  0x13   : > { %2367 = vrot.lane.b32.xlu0 %v2634_v6, %s2556_s7  ;;  %v305_v15 = vsel %vm302_vm0, %v303_v9, %v304_v10  ;;  %v307_v16 = vsel %vm302_vm0, %v304_v10, %v306_v8  ;;  %v316_v24 = vrot.slane %v2659_v19, 1  ;;  %v312_v28 = vrot.slane %v2676_v27, 1  ;;  %v2718_v46 = vld [vmem:[%s2618_s29 + $0x48] sm:$0xff]  ;;  %v2257_v48 = vld [vmem:[%s3273_s1 + $0x70] sm:$0xff]  ;;  %v2263_v53 = vld [vmem:[%s3273_s1 + $0xa0] sm:$0xff] }
  0x14   : > { %v309_v14 = vsel %vm302_vm0, %v306_v8, %v308_v12  ;;  %v2371_v21 = vpack.i.bf16 %v307_v16, %v305_v15  ;;  %v311_v23 = vsel %vm302_vm0, %v308_v12, %v310_v17  ;;  %v318_v31 = vrot.slane %v2673_v26, 1  ;;  %2332 = vmatpush.bf16.msra.mxu3 %v2257_v48  ;;  %v2256_v52 = vld [vmem:[%s3273_s1 + $0x68] sm:$0xff]  ;;  %1073 = vmatpush.bf16.msra.mxu1 %v2257_v48  ;;  %v2255_v54 = vld [vmem:[%s3273_s1 + $0x60] sm:$0xff]  ;;  %v2262_v55 = vld [vmem:[%s3273_s1 + $0x98] sm:$0xff] }
  0x15   : > { %2325 = vmatpush.bf16.msra.mxu2 %v2248_v2  ;;  %1045 = vmatpush.bf16.msra.mxu0 %v2248_v2  ;;  %v2656_v18 = vpack.i.bf16 %v309_v14, %v2630_v5  ;;  %v2381_v29 = vpack.i.bf16 %v311_v23, %v2637_v7  ;;  %v317_v32 = vsel %vm302_vm0, %v314_v25, %v316_v24  ;;  %v320_v47 = vrot.slane %v2718_v46, 1  ;;  %v260_v56 = vld [vmem:[%s2618_s29 + $0x50] sm:$0xff]  ;;  %v2254_v57 = vld [vmem:[%s3273_s1 + $0x58] sm:$0xff]  ;;  %v2260_v62 = vld [vmem:[%s3273_s1 + $0x88] sm:$0xff] }
  0x16   : > { %v313_v33 = vsel %vm302_vm0, %v310_v17, %v312_v28  ;;  %v2396_v36 = vpack.i.bf16 %v317_v32, %v2662_v20  ;;  %v319_v37 = vsel %vm302_vm0, %v316_v24, %v318_v31  ;;  %v315_v38 = vsel %vm302_vm0, %v312_v28, %v314_v25  ;;  %v2261_v59 = vld [vmem:[%s3273_s1 + $0x90] sm:$0xff]  ;;  %v2252_v0 = vld [vmem:[%s3273_s1 + $0x48] sm:$0xff]  ;;  %v2259_v2 = vld [vmem:[%s3273_s1 + $0x80] sm:$0xff] }
  0x17   : > { %2377 = vrot.lane.b32.xlu1 %v2656_v18, %s2556_s7  ;;  %v2386_v34 = vpack.i.bf16 %v313_v33, %v2643_v11  ;;  %v2401_v39 = vpack.i.bf16 %v319_v37, %v2659_v19  ;;  %v2391_v42 = vpack.i.bf16 %v315_v38, %v2676_v27  ;;  %v2710_v44 = vpack.c.bf16 %v2676_v27, %v2643_v11  ;;  %v2253_v61 = vld [vmem:[%s3273_s1 + $0x50] sm:$0xff]  ;;  %v2274_v12 = vld [vmem:[%s3273_s1 + $0xf8] sm:$0xff]  ;;  %v2280_v17 = vld [vmem:[%s3273_s1 + $0x128] sm:$0xff] }
  0x18   : > { %v321_v50 = vsel %vm302_vm0, %v318_v31, %v320_v47  ;;  %2333 = vmatpush.bf16.msra.mxu3 %v2256_v52  ;;  %1074 = vmatpush.bf16.msra.mxu1 %v2256_v52  ;;  %v2756_v58 = vpack.c.bf16 %v2659_v19, %v2662_v20  ;;  %v322_v60 = vrot.slane %v260_v56, 1  ;;  %v451_v8 = vpack.c.bf16 %v2662_v20, %v2676_v27  ;;  %v2290_v15 = vld [vmem:[%s3273_s1 + $0x178] sm:$0xff]  ;;  %v2281_v16 = vld [vmem:[%s3273_s1 + $0x130] sm:$0xff]  ;;  %v2271_v20 = vld [vmem:[%s3273_s1 + $0xe0] sm:$0xff] }
  0x19   : > { %2326 = vmatpush.bf16.msra.mxu2 %v2247_v13  ;;  %1046 = vmatpush.bf16.msra.mxu0 %v2247_v13  ;;  %v2732_v51 = vpack.i.bf16 %v321_v50, %v2673_v26  ;;  %v438_v9 = vpack.c.bf16 %v2637_v7, %v2630_v5  ;;  %v436_v10 = vpack.c.bf16 %v2627_v4, %v2624_v3  ;;  %v2282_v13 = vld [vmem:[%s3273_s1 + $0x138] sm:$0xff]  ;;  %v2273_v3 = vld [vmem:[%s3273_s1 + $0xf0] sm:$0xff]  ;;  %v2287_v24 = vld [vmem:[%s3273_s1 + $0x160] sm:$0xff] }
  0x1a   : > { %2387 = vrot.lane.b32.xlu2 %v2386_v34, %s2556_s7  ;;  %v323_v63 = vsel %vm302_vm0, %v320_v47, %v322_v60  ;;  %v437_v14 = vpack.c.bf16 %v2630_v5, %v2627_v4  ;;  %v2289_v4 = vld [vmem:[%s3273_s1 + $0x170] sm:$0xff]  ;;  %v2272_v5 = vld [vmem:[%s3273_s1 + $0xe8] sm:$0xff]  ;;  %v2270_v23 = vld [vmem:[%s3273_s1 + $0xd8] sm:$0xff] }
  0x1b   : > { %2372 = vrot.lane.b32.xlu0 %v2371_v21, %s2556_s7  ;;  %v2777_v1 = vpack.i.bf16 %v323_v63, %v2718_v46  ;;  %v2278_v25 = vld [vmem:[%s3273_s1 + $0x118] sm:$0xff]  ;;  %v2277_v28 = vld [vmem:[%s3273_s1 + $0x110] sm:$0xff]  ;;  %v2276_v32 = vld [vmem:[%s3273_s1 + $0x108] sm:$0xff] }
  0x1c   : > { %2334 = vmatpush.bf16.msra.mxu3 %v2255_v54  ;;  %1075 = vmatpush.bf16.msra.mxu1 %v2255_v54  ;;  %v2298_v27 = vld [vmem:[%s3273_s1 + $0x1b8] sm:$0xff]  ;;  %v2297_v31 = vld [vmem:[%s3273_s1 + $0x1b0] sm:$0xff]  ;;  %v2267_v33 = vld [vmem:[%s3273_s1 + $0xc0] sm:$0xff] }
  0x1d   : > { %2327 = vmatpush.bf16.msra.mxu2 %v2246_v22  ;;  %1047 = vmatpush.bf16.msra.mxu0 %v2246_v22  ;;  %v2279_v22 = vld [vmem:[%s3273_s1 + $0x120] sm:$0xff]  ;;  %v2305_v43 = vld [vmem:[%s3273_s1 + $0x1f0] sm:$0xff]  ;;  %v2304_v47 = vld [vmem:[%s3273_s1 + $0x1e8] sm:$0xff] }
  0x1e   : > { %v2283_v37 = vld [vmem:[%s3273_s1 + $0x140] sm:$0xff]  ;;  %v2313_v48 = vld [vmem:[%s3273_s1 + $0x230] sm:$0xff]  ;;  %v2312_v50 = vld [vmem:[%s3273_s1 + $0x228] sm:$0xff] }
  0x1f   : > { %2382 = vrot.lane.b32.xlu1 %v2381_v29, %s2556_s7  ;;  %v2295_v38 = vld [vmem:[%s3273_s1 + $0x1a0] sm:$0xff] }
  0x20   : > { %2335 = vmatpush.bf16.msra.mxu3 %v2254_v57  ;;  %1076 = vmatpush.bf16.msra.mxu1 %v2254_v57 }
  0x21   : > { %2328 = vmatpush.bf16.msra.mxu2 %v2245_v30  ;;  %1048 = vmatpush.bf16.msra.mxu0 %v2245_v30  ;;  %v2285_v30 = vld [vmem:[%s3273_s1 + $0x150] sm:$0xff] }
  0x22   : > { %2392 = vrot.lane.b32.xlu2 %v2391_v42, %s2556_s7 }
  0x23   : > { %2397 = vrot.lane.b32.xlu0 %v2396_v36, %s2556_s7 }
  0x24   : > { %2336 = vmatpush.bf16.msra.mxu3 %v2253_v61  ;;  %1077 = vmatpush.bf16.msra.mxu1 %v2253_v61 }
  0x25   : > { %2329 = vmatpush.bf16.msra.mxu2 %v2244_v35  ;;  %1049 = vmatpush.bf16.msra.mxu0 %v2244_v35  ;;  %v2296_v35 = vld [vmem:[%s3273_s1 + $0x1a8] sm:$0xff] }
  0x27   : > { %2402 = vrot.lane.b32.xlu1 %v2401_v39, %s2556_s7 }
  0x28   : > { %2337 = vmatpush.bf16.msra.mxu3 %v2252_v0  ;;  %1078 = vmatpush.bf16.msra.mxu1 %v2252_v0 }
  0x29   : > { %2330 = vmatpush.bf16.msra.mxu2 %v2243_v40  ;;  %1050 = vmatpush.bf16.msra.mxu0 %v2243_v40  ;;  %v458_v40 = vpack.c.bf16 %v2718_v46, %v2673_v26 }
  0x2a   : > { %2407 = vrot.lane.b32.xlu2 %v2732_v51, %s2556_s7 }
  0x2b   : > { %2412 = vrot.lane.b32.xlu0 %v2634_v6, %s2557_s6  ;;  %v2251_v6 = vld [vmem:[%s3273_s1 + $0x40] sm:$0xff] }
  0x2c   : > { %1061 = vmatmul.bf16.vlgmr.msra.gmra.mxu2 %v2710_v44  ;;  %2338 = vmatpush.bf16.msra.mxu3 %v2251_v6 }
  0x2d   : > { %1101 = vmatpush.bf16.msrb.mxu2 %v2266_v41  ;;  %1079 = vmatpush.bf16.msra.mxu1 %v2251_v6  ;;  %v2294_v41 = vld [vmem:[%s3273_s1 + $0x198] sm:$0xff] }
  0x2e   : > { %1051 = vmatmul.bf16.vlgmr.msra.gmra.mxu0 %v436_v10 }
  0x2f   : > { %2417 = vrot.lane.b32.xlu1 %v2371_v21, %s2557_s6  ;;  %1090 = vmatmul.bf16.vlgmr.msra.gmra.mxu3 %v451_v8  ;;  %v2288_v21 = vld [vmem:[%s3273_s1 + $0x168] sm:$0xff]  ;;  %v2302_v8 = vld [vmem:[%s3273_s1 + $0x1d8] sm:$0xff] }
  0x30   : > { %1130 = vmatpush.bf16.msrb.mxu3 %v2274_v12  ;;  %1159 = vmatpush.bf16.msrb.mxu0 %v2282_v13 }
  0x31   : > { %1102 = vmatpush.bf16.msrb.mxu2 %v2265_v45  ;;  %1080 = vmatmul.bf16.vlgmr.msra.gmra.mxu1 %v437_v14  ;;  %v2291_v45 = vld [vmem:[%s3273_s1 + $0x180] sm:$0xff] }
  0x32   : > { %2422 = vrot.lane.b32.xlu2 %v2656_v18, %s2557_s6  ;;  %1188 = vmatpush.bf16.msrb.mxu1 %v2290_v15  ;;  %v457_v18 = vpack.c.bf16 %v2673_v26, %v2659_v19  ;;  %v445_v19 = vpack.c.bf16 %v2643_v11, %v2637_v7  ;;  %v2269_v7 = vld [vmem:[%s3273_s1 + $0xd0] sm:$0xff]  ;;  %v2286_v11 = vld [vmem:[%s3273_s1 + $0x158] sm:$0xff]  ;;  %v2292_v26 = vld [vmem:[%s3273_s1 + $0x188] sm:$0xff] }
  0x33   : > { %2427 = vrot.lane.b32.xlu0 %v2381_v29, %s2557_s6  ;;  %v2268_v29 = vld [vmem:[%s3273_s1 + $0xc8] sm:$0xff]  ;;  %v2301_v15 = vld [vmem:[%s3273_s1 + $0x1d0] sm:$0xff] }
  0x34   : > { %1131 = vmatpush.bf16.msrb.mxu3 %v2273_v3  ;;  %1160 = vmatpush.bf16.msrb.mxu0 %v2281_v16  ;;  %v2310_v3 = vld [vmem:[%s3273_s1 + $0x218] sm:$0xff] }
  0x35   : > { %1103 = vmatpush.bf16.msrb.mxu2 %v2264_v49  ;;  %v2303_v49 = vld [vmem:[%s3273_s1 + $0x1e0] sm:$0xff] }
  0x36   : > { %1189 = vmatpush.bf16.msrb.mxu1 %v2289_v4 }
  0x37   : > { %2432 = vrot.lane.b32.xlu1 %v2386_v34, %s2557_s6  ;;  %v2284_v34 = vld [vmem:[%s3273_s1 + $0x148] sm:$0xff] }
  0x38   : > { %1132 = vmatpush.bf16.msrb.mxu3 %v2272_v5  ;;  %1161 = vmatpush.bf16.msrb.mxu0 %v2280_v17 }
  0x39   : > { %1104 = vmatpush.bf16.msrb.mxu2 %v2263_v53 }
  0x3a   : > { %2437 = vrot.lane.b32.xlu2 %v2391_v42, %s2557_s6  ;;  %1190 = vmatpush.bf16.msrb.mxu1 %v2288_v21  ;;  %v2293_v42 = vld [vmem:[%s3273_s1 + $0x190] sm:$0xff] }
  0x3b   : > { %2442 = vrot.lane.b32.xlu0 %v2396_v36, %s2557_s6  ;;  %v2275_v36 = vld [vmem:[%s3273_s1 + $0x100] sm:$0xff] }
  0x3c   : > { %1066 = vmatmul.bf16.gmra.mxu2 %v2756_v58  ;;  %1133 = vmatpush.bf16.msrb.mxu3 %v2271_v20 }
  0x3d   : > { %1105 = vmatpush.bf16.msrb.mxu2 %v2262_v55  ;;  %1162 = vmatpush.bf16.msrb.mxu0 %v2279_v22 }
  0x3e   : > { %1056 = vmatmul.bf16.gmra.mxu0 %v438_v9  ;;  %1191 = vmatpush.bf16.msrb.mxu1 %v2287_v24 }
  0x3f   : > { %2447 = vrot.lane.b32.xlu1 %v2401_v39, %s2557_s6  ;;  %1095 = vmatmul.bf16.gmra.mxu3 %v457_v18  ;;  %v2306_v39 = vld [vmem:[%s3273_s1 + $0x1f8] sm:$0xff] }
  0x40   : > { %1134 = vmatpush.bf16.msrb.mxu3 %v2270_v23 }
  0x41   : > { %1106 = vmatpush.bf16.msrb.mxu2 %v2261_v59  ;;  %1085 = vmatmul.bf16.gmra.mxu1 %v445_v19 }
  0x42   : > { %1163 = vmatpush.bf16.msrb.mxu0 %v2278_v25  ;;  %1192 = vmatpush.bf16.msrb.mxu1 %v2286_v11 }
  0x43   : > { %2457 = vrot.lane.b32.xlu0 %v2777_v1, %s2556_s7  ;;  %2452 = vrot.lane.b32.xlu2 %v2732_v51, %s2557_s6 }
  0x44   : > { %1135 = vmatpush.bf16.msrb.mxu3 %v2269_v7 }
  0x45   : > { %1107 = vmatpush.bf16.msrb.mxu2 %v2260_v62 }
  0x46   : > { %1164 = vmatpush.bf16.msrb.mxu0 %v2277_v28  ;;  %1193 = vmatpush.bf16.msrb.mxu1 %v2285_v30  ;;  %v2309_v30 = vld [vmem:[%s3273_s1 + $0x210] sm:$0xff] }
  0x47   : > { %2462 = vrot.lane.b32.xlu1 %v2777_v1, %s2557_s6  ;;  %s2242_s6 = sshll.u32 %s3283_s18, 6 }
  0x48   : > { %1136 = vmatpush.bf16.msrb.mxu3 %v2268_v29  ;;  %v2300_v29 = vld [vmem:[%s3273_s1 + $0x1c8] sm:$0xff]  ;;  %s3217_s8 = scalar_lea.vmem %s3277_s5, %s2242_s6 }
  0x49   : > { %1108 = vmatpush.bf16.msrb.mxu2 %v2259_v2 }
  0x4a   : > { %1165 = vmatpush.bf16.msrb.mxu0 %v2276_v32  ;;  %1194 = vmatpush.bf16.msrb.mxu1 %v2284_v34 }
  0x4c   : > { %1109 = vmatmul.bf16.vlgmr.msrb.gmra.mxu2 %v438_v9  ;;  %1137 = vmatpush.bf16.msrb.mxu3 %v2267_v33  ;;  %v2311_v9 = vld [vmem:[%s3273_s1 + $0x220] sm:$0xff] }
  0x4d   : > { %1217 = vmatpush.bf16.msra.mxu2 %v2298_v27 }
  0x4e   : > { %1166 = vmatpush.bf16.msrb.mxu0 %v2275_v36  ;;  %1195 = vmatpush.bf16.msrb.mxu1 %v2283_v37  ;;  %v2299_v37 = vld [vmem:[%s3273_s1 + $0x1c0] sm:$0xff] }
  0x50   : > { %1246 = vmatpush.bf16.msra.mxu3 %v2306_v39 }
  0x51   : > { %1218 = vmatpush.bf16.msra.mxu2 %v2297_v31 }
  0x54   : > { %1247 = vmatpush.bf16.msra.mxu3 %v2305_v43 }
  0x55   : > { %1219 = vmatpush.bf16.msra.mxu2 %v2296_v35 }
  0x58   : > { %1248 = vmatpush.bf16.msra.mxu3 %v2304_v47  ;;  %v2307_v47 = vld [vmem:[%s3273_s1 + $0x200] sm:$0xff] }
  0x59   : > { %1220 = vmatpush.bf16.msra.mxu2 %v2295_v38  ;;  %v2308_v38 = vld [vmem:[%s3273_s1 + $0x208] sm:$0xff] }
  0x5c   : > { %1114 = vmatmul.bf16.gmra.mxu2 %v2710_v44  ;;  %v2314_v44 = vld [vmem:[%s3273_s1 + $0x238] sm:$0xff]  ;;  %1249 = vmatpush.bf16.msra.mxu3 %v2303_v49 }
  0x5d   : > { %1221 = vmatpush.bf16.msra.mxu2 %v2294_v41  ;;  %1275 = vmatpush.bf16.msra.mxu0 %v2314_v44 }
  0x60   : > { %1250 = vmatpush.bf16.msra.mxu3 %v2302_v8 }
  0x61   : > { %1222 = vmatpush.bf16.msra.mxu2 %v2293_v42  ;;  %1276 = vmatpush.bf16.msra.mxu0 %v2313_v48 }
  0x64   : > { %1251 = vmatpush.bf16.msra.mxu3 %v2301_v15 }
  0x65   : > { %1223 = vmatpush.bf16.msra.mxu2 %v2292_v26  ;;  %1277 = vmatpush.bf16.msra.mxu0 %v2312_v50 }
  0x68   : > { %1252 = vmatpush.bf16.msra.mxu3 %v2300_v29 }
  0x69   : > { %1224 = vmatpush.bf16.msra.mxu2 %v2291_v45  ;;  %1278 = vmatpush.bf16.msra.mxu0 %v2311_v9 }
  0x6c   : > { %1119 = vmatmul.bf16.gmra.mxu2 %v2756_v58  ;;  %1253 = vmatpush.bf16.msra.mxu3 %v2299_v37 }
  0x6d   : > { %1279 = vmatpush.bf16.msra.mxu0 %v2310_v3  ;;  %v2978_v3 = vld [vmem:[%s3274_s2] ss:$0 sm:$0xff] }
  0x71   : > { %1280 = vmatpush.bf16.msra.mxu0 %v2309_v30 }
  0x74   : > { %v2388_v54 = vpop.permute.xlu2 %2387 }
  0x75   : > { %v2390_v16 = vunpack.i.h.bf16 %v2388_v54  ;;  %v2389_v4 = vunpack.i.l.bf16 %v2388_v54  ;;  %1281 = vmatpush.bf16.msra.mxu0 %v2308_v38 }
  0x77   : > { %v359_v20 = vsel %vm354_vm1, %v2389_v4, %v2390_v16 }
  0x79   : > { %1282 = vmatpush.bf16.msra.mxu0 %v2307_v47 }
  0x7c   : > { %1124 = vmatmul.bf16.gmra.mxu2 %v458_v40  ;;  %v2393_v12 = vpop.permute.xlu2 %2392 }
  0x7d   : > { %v2395_v17 = vunpack.i.h.bf16 %v2393_v12  ;;  %v2394_v18 = vunpack.i.l.bf16 %v2393_v12 }
  0x7f   : > { %v360_v25 = vsel %vm354_vm1, %v2394_v18, %v2395_v17 }
  0x80   : > { %v448_v28 = vpack.c.bf16 %v360_v25, %v359_v20 }
  0x84   : > { %v2408_v22 = vpop.permute.xlu2 %2407 }
  0x85   : > { %v2368_v46 = vpop.permute.xlu0 %2367 }
  0x86   : > { %v2370_v55 = vunpack.i.h.bf16 %v2368_v46  ;;  %v2369_v57 = vunpack.i.l.bf16 %v2368_v46 }
  0x89   : > { %v2378_v51 = vpop.permute.xlu1 %2377 }
  0x8a   : > { %v2380_v52 = vunpack.i.h.bf16 %v2378_v51  ;;  %v2379_v53 = vunpack.i.l.bf16 %v2378_v51 }
  0x8c   : > { %v357_v60 = vsel %vm354_vm1, %v2379_v53, %v2380_v52  ;;  %v2423_v39 = vpop.permute.xlu2 %2422 }
  0x8d   : > { %v2373_v56 = vpop.permute.xlu0 %2372  ;;  %v2425_v40 = vunpack.i.h.bf16 %v2423_v39  ;;  %v2424_v41 = vunpack.i.l.bf16 %v2423_v39 }
  0x8e   : > { %v2375_v58 = vunpack.i.h.bf16 %v2373_v56  ;;  %v2374_v59 = vunpack.i.l.bf16 %v2373_v56  ;;  %v2410_v56 = vunpack.i.h.bf16 %v2408_v22 }
  0x8f   : > { %v428_v51 = vsel %vm425_vm2, %v2424_v41, %v2425_v40 }
  0x90   : > { %v355_v61 = vsel %vm354_vm1, %v2369_v57, %v2374_v59  ;;  %v356_v62 = vsel %vm354_vm1, %v2370_v55, %v2375_v58  ;;  %v2409_v57 = vunpack.i.l.bf16 %v2408_v22 }
  0x91   : > { %v2383_v63 = vpop.permute.xlu1 %2382  ;;  %v439_v0 = vpack.c.bf16 %v356_v62, %v355_v61  ;;  %v440_v1 = vpack.c.bf16 %v357_v60, %v356_v62 }
  0x92   : > { %v2385_v2 = vunpack.i.h.bf16 %v2383_v63  ;;  %v2384_v6 = vunpack.i.l.bf16 %v2383_v63  ;;  %v363_v63 = vsel %vm354_vm1, %v2409_v57, %v2410_v56 }
  0x93   : > { %1138 = vmatmul.bf16.vlgmr.msrb.gmra.mxu3 %v439_v0  ;;  %1167 = vmatmul.bf16.vlgmr.msrb.gmra.mxu0 %v440_v1 }
  0x94   : > { %v358_v10 = vsel %vm354_vm1, %v2384_v6, %v2385_v2  ;;  %v2438_v58 = vpop.permute.xlu2 %2437 }
  0x95   : > { %v441_v13 = vpack.c.bf16 %v358_v10, %v357_v60  ;;  %v2398_v14 = vpop.permute.xlu0 %2397  ;;  %v447_v19 = vpack.c.bf16 %v359_v20, %v358_v10  ;;  %v2440_v61 = vunpack.i.h.bf16 %v2438_v58  ;;  %v2439_v62 = vunpack.i.l.bf16 %v2438_v58 }
  0x96   : > { %v2400_v35 = vunpack.i.h.bf16 %v2398_v14  ;;  %v2399_v36 = vunpack.i.l.bf16 %v2398_v14 }
  0x97   : > { %1196 = vmatmul.bf16.vlgmr.msrb.gmra.mxu1 %v441_v13 }
  0x98   : > { %v361_v42 = vsel %vm354_vm1, %v2399_v36, %v2400_v35 }
  0x99   : > { %v2403_v5 = vpop.permute.xlu1 %2402  ;;  %v453_v48 = vpack.c.bf16 %v361_v42, %v360_v25 }
  0x9a   : > { %v2405_v43 = vunpack.i.h.bf16 %v2403_v5  ;;  %v2404_v44 = vunpack.i.l.bf16 %v2403_v5 }
  0x9c   : > { %v362_v50 = vsel %vm354_vm1, %v2404_v44, %v2405_v43 }
  0x9d   : > { %v2413_v21 = vpop.permute.xlu0 %2412  ;;  %v454_v53 = vpack.c.bf16 %v362_v50, %v361_v42  ;;  %v459_v9 = vpack.c.bf16 %v363_v63, %v362_v50  ;;  %v2453_v56 = vpop.permute.xlu2 %2452 }
  0x9e   : > { %v2415_v23 = vunpack.i.h.bf16 %v2413_v21  ;;  %v2414_v24 = vunpack.i.l.bf16 %v2413_v21 }
  0xa1   : > { %v2418_v7 = vpop.permute.xlu1 %2417 }
  0xa2   : > { %v2420_v11 = vunpack.i.h.bf16 %v2418_v7  ;;  %v2419_v27 = vunpack.i.l.bf16 %v2418_v7 }
  0xa3   : > { %1143 = vmatmul.bf16.gmra.mxu3 %v441_v13  ;;  %1172 = vmatmul.bf16.gmra.mxu0 %v447_v19  ;;  %v431_v13 = vsel %vm425_vm2, %v2439_v62, %v2440_v61 }
  0xa4   : > { %v2951_v31 = vsel %vm425_vm2, %v2415_v23, %v2420_v11  ;;  %v426_v32 = vsel %vm425_vm2, %v2414_v24, %v2419_v27 }
  0xa5   : > { %v442_v33 = vpack.c.bf16 %v2951_v31, %v426_v32  ;;  %v2428_v34 = vpop.permute.xlu0 %2427  ;;  %v443_v11 = vpack.c.bf16 %v428_v51, %v2951_v31 }
  0xa6   : > { %v2430_v26 = vunpack.i.h.bf16 %v2428_v34  ;;  %v2429_v45 = vunpack.i.l.bf16 %v2428_v34 }
  0xa7   : > { %1201 = vmatmul.bf16.gmra.mxu1 %v448_v28  ;;  %1225 = vmatmul.bf16.vlgmr.msra.gmra.mxu2 %v442_v33 }
  0xa8   : > { %v2968_v52 = vsel %vm425_vm2, %v2429_v45, %v2430_v26 }
  0xa9   : > { %v444_v54 = vpack.c.bf16 %v2968_v52, %v428_v51  ;;  %v2433_v59 = vpop.permute.xlu1 %2432 }
  0xaa   : > { %v2435_v0 = vunpack.i.h.bf16 %v2433_v59  ;;  %v2434_v1 = vunpack.i.l.bf16 %v2433_v59  ;;  %v2455_v59 = vunpack.i.h.bf16 %v2453_v56 }
  0xab   : > { %v1052_v27 = vpop.f32.mrf.mxu0 }
  0xac   : > { %v430_v12 = vsel %vm425_vm2, %v2434_v1, %v2435_v0  ;;  %v1053_v34 = vadd.f32 %v2978_v3, %v1052_v27 }
  0xad   : > { %v2443_v49 = vpop.permute.xlu0 %2442  ;;  %v450_v15 = vpack.c.bf16 %v431_v13, %v430_v12  ;;  %v449_v43 = vpack.c.bf16 %v430_v12, %v2968_v52 }
  0xae   : > { %v2445_v17 = vunpack.i.h.bf16 %v2443_v49  ;;  %v2444_v20 = vunpack.i.l.bf16 %v2443_v49  ;;  %v1081_v33 = vpop.f32.mrf.mxu1 }
  0xaf   : > { %v1062_v46 = vpop.f32.mrf.mxu2  ;;  %v1082_v36 = vadd.f32 %v1081_v33, %v1053_v34 }
  0xb0   : > { %v1063_v4 = vadd.f32 %v2978_v3, %v1062_v46  ;;  %v432_v25 = vsel %vm425_vm2, %v2444_v20, %v2445_v17 }
  0xb1   : > { %v2448_v5 = vpop.permute.xlu1 %2447 }
  0xb2   : > { %v1091_v18 = vpop.f32.mrf.mxu3  ;;  %v2450_v21 = vunpack.i.h.bf16 %v2448_v5  ;;  %v2449_v22 = vunpack.i.l.bf16 %v2448_v5 }
  0xb3   : > { %1148 = vmatmul.bf16.gmra.mxu3 %v448_v28  ;;  %1177 = vmatmul.bf16.gmra.mxu0 %v453_v48  ;;  %v1092_v19 = vadd.f32 %v1091_v18, %v1063_v4  ;;  %v2991_v37 = vpop.f32.mrf.mxu0 }
  0xb4   : > { %v433_v7 = vsel %vm425_vm2, %v2449_v22, %v2450_v21  ;;  %v2322_v21 = vld [vmem:[%s3275_s3 + $0x38] sm:$0xff] }
  0xb5   : > { %v2458_v60 = vpop.permute.xlu0 %2457  ;;  %v456_v28 = vpack.c.bf16 %v433_v7, %v432_v25  ;;  %1584 = vmatpush.bf16.msra.mxu1 %v2322_v21 }
  0xb6   : > { %v2460_v2 = vunpack.i.h.bf16 %v2458_v60  ;;  %v2459_v6 = vunpack.i.l.bf16 %v2458_v60  ;;  %v2993_v41 = vpop.f32.mrf.mxu1  ;;  %v2454_v60 = vunpack.i.l.bf16 %v2453_v56 }
  0xb7   : > { %v1064_v55 = vpop.f32.mrf.mxu2  ;;  %1206 = vmatmul.bf16.gmra.mxu1 %v454_v53  ;;  %1230 = vmatmul.bf16.gmra.mxu2 %v444_v54 }
  0xb8   : > { %v364_v10 = vsel %vm354_vm1, %v2459_v6, %v2460_v2  ;;  %v1065_v24 = vadd.f32 %v2978_v3, %v1064_v55  ;;  %v434_v0 = vsel %vm425_vm2, %v2454_v60, %v2455_v59 }
  0xb9   : > { %v460_v14 = vpack.c.bf16 %v364_v10, %v363_v63  ;;  %v2463_v52 = vpop.permute.xlu1 %2462  ;;  %v461_v2 = vpack.c.bf16 %v434_v0, %v433_v7 }
  0xba   : > { %v1093_v29 = vpop.f32.mrf.mxu3  ;;  %v2465_v57 = vunpack.i.h.bf16 %v2463_v52  ;;  %v2464_v58 = vunpack.i.l.bf16 %v2463_v52 }
  0xbb   : > { %v2985_v30 = vadd.f32 %v1093_v29, %v1065_v24  ;;  %v1057_v46 = vpop.f32.mrf.mxu0 }
  0xbc   : > { %v1058_v47 = vadd.f32 %v2978_v3, %v1057_v46  ;;  %v435_v61 = vsel %vm425_vm2, %v2464_v58, %v2465_v57 }
  0xbd   : > { %v462_v1 = vpack.c.bf16 %v435_v61, %v434_v0 }
  0xbe   : > { %v1086_v48 = vpop.f32.mrf.mxu1 }
  0xbf   : > { %v1067_v8 = vpop.f32.mrf.mxu2  ;;  %v1087_v49 = vadd.f32 %v1086_v48, %v1058_v47 }
  0xc0   : > { %v1068_v35 = vadd.f32 %v2978_v3, %v1067_v8 }
  0xc2   : > { %v1096_v38 = vpop.f32.mrf.mxu3 }
  0xc3   : > { %1153 = vmatmul.bf16.gmra.mxu3 %v454_v53  ;;  %1182 = vmatmul.bf16.gmra.mxu0 %v459_v9  ;;  %v1097_v31 = vadd.f32 %v1096_v38, %v1068_v35  ;;  %v1059_v6 = vpop.f32.mrf.mxu0 }
  0xc4   : > { %v1060_v52 = vadd.f32 %v2978_v3, %v1059_v6 }
  0xc6   : > { %v1088_v22 = vpop.f32.mrf.mxu1 }
  0xc7   : > { %v1069_v16 = vpop.f32.mrf.mxu2  ;;  %1211 = vmatmul.bf16.gmra.mxu1 %v460_v14  ;;  %1235 = vmatmul.bf16.gmra.mxu2 %v450_v15  ;;  %v1089_v59 = vadd.f32 %v1088_v22, %v1060_v52 }
  0xc8   : > { %v1070_v42 = vadd.f32 %v2978_v3, %v1069_v16 }
  0xca   : > { %v1098_v44 = vpop.f32.mrf.mxu3 }
  0xcb   : > { %v2997_v26 = vadd.f32 %v1098_v44, %v1070_v42 }
  0xcf   : > { %v1110_v23 = vpop.f32.mrf.mxu2 }
  0xd0   : > { %v1111_v40 = vadd.f32 %v1110_v23, %v1082_v36  ;;  %v1055_v36 = vadd.f32 %v2978_v3, %v2991_v37  ;;  %v2319_v3 = vld [vmem:[%s3275_s3 + $0x20] sm:$0xff] }
  0xd3   : > { %1254 = vmatmul.bf16.vlgmr.msra.gmra.mxu3 %v443_v11  ;;  %1283 = vmatmul.bf16.vlgmr.msra.gmra.mxu0 %v444_v54  ;;  %v455_v54 = vpack.c.bf16 %v432_v25, %v431_v13 }
  0xd7   : > { %v2987_v32 = vpop.f32.mrf.mxu2  ;;  %1240 = vmatmul.bf16.gmra.mxu2 %v456_v28 }
  0xdf   : > { %v1115_v39 = vpop.f32.mrf.mxu2 }
  0xe0   : > { %v1116_v53 = vadd.f32 %v1115_v39, %v1087_v49  ;;  %v1084_v39 = vadd.f32 %v2993_v41, %v1055_v36 }
  0xe2   : > { %v1113_v44 = vadd.f32 %v2987_v32, %v1084_v39  ;;  %v2320_v32 = vld [vmem:[%s3275_s3 + $0x28] sm:$0xff] }
  0xe3   : > { %1259 = vmatmul.bf16.gmra.mxu3 %v449_v43  ;;  %1288 = vmatmul.bf16.gmra.mxu0 %v450_v15 }
  0xe7   : > { %v2999_v45 = vpop.f32.mrf.mxu2 }
  0xe8   : > { %v1118_v6 = vadd.f32 %v2999_v45, %v1089_v59  ;;  %v2317_v45 = vld [vmem:[%s3275_s3 + $0x10] sm:$0xff] }
  0xef   : > { %v1120_v50 = vpop.f32.mrf.mxu2 }
  0xf0   : > { %v1121_v51 = vadd.f32 %v1120_v50, %v1092_v19  ;;  %v2321_v50 = vld [vmem:[%s3275_s3 + $0x30] sm:$0xff] }
  0xf1   : > { %1585 = vmatpush.bf16.msra.mxu1 %v2321_v50 }
  0xf3   : > { %1264 = vmatmul.bf16.gmra.mxu3 %v455_v54  ;;  %1293 = vmatmul.bf16.gmra.mxu0 %v456_v28 }
  0xf5   : > { %1586 = vmatpush.bf16.msra.mxu1 %v2320_v32 }
  0xf7   : > { %v3002_v55 = vpop.f32.mrf.mxu2 }
  0xf9   : > { %1587 = vmatpush.bf16.msra.mxu1 %v2319_v3 }
  0xff   : > { %v1125_v62 = vpop.f32.mrf.mxu2 }
 0x100   : > { %v1126_v63 = vadd.f32 %v1125_v62, %v1097_v31 }
 0x103   : > { %1269 = vmatmul.bf16.gmra.mxu3 %v461_v2  ;;  %1298 = vmatmul.bf16.gmra.mxu0 %v462_v1 }
 0x107   : > { %v3015_v7 = vpop.f32.mrf.mxu2 }
 0x110   : > { %v1168_v8 = vpop.f32.mrf.mxu0 }
 0x114   : > { %v1197_v27 = vpop.f32.mrf.mxu1 }
 0x116   : > { %v1139_v9 = vpop.f32.mrf.mxu3 }
 0x117   : > { %v1140_v10 = vadd.f32 %v1139_v9, %v1111_v40 }
 0x118   : > { %v1170_v12 = vpop.f32.mrf.mxu0 }
 0x119   : > { %v1169_v13 = vadd.f32 %v1168_v8, %v1140_v10 }
 0x11b   : > { %v1198_v48 = vadd.f32 %v1197_v27, %v1169_v13 }
 0x11c   : > { %v1199_v38 = vpop.f32.mrf.mxu1 }
 0x11e   : > { %v1141_v14 = vpop.f32.mrf.mxu3 }
 0x11f   : > { %v1142_v46 = vadd.f32 %v1141_v14, %v1113_v44 }
 0x120   : > { %v1173_v15 = vpop.f32.mrf.mxu0 }
 0x124   : > { %v1202_v47 = vpop.f32.mrf.mxu1 }
 0x126   : > { %v1144_v16 = vpop.f32.mrf.mxu3 }
 0x127   : > { %v1145_v4 = vadd.f32 %v1144_v16, %v1116_v53 }
 0x128   : > { %v3006_v5 = vpop.f32.mrf.mxu0 }
 0x129   : > { %v1174_v17 = vadd.f32 %v1173_v15, %v1145_v4 }
 0x12a   : > { %v1226_v29 = vpop.f32.mrf.mxu2 }
 0x12b   : > { %v1227_v49 = vadd.f32 %v1226_v29, %v1198_v48  ;;  %v1203_v14 = vadd.f32 %v1202_v47, %v1174_v17  ;;  %v2315_v48 = vld [vmem:[%s3275_s3] sm:$0xff] }
 0x12c   : > { %v1204_v60 = vpop.f32.mrf.mxu1 }
 0x12e   : > { %v1146_v18 = vpop.f32.mrf.mxu3 }
 0x12f   : > { %v1147_v13 = vadd.f32 %v1146_v18, %v1118_v6 }
 0x130   : > { %v1178_v20 = vpop.f32.mrf.mxu0 }
 0x131   : > { %v1176_v21 = vadd.f32 %v3006_v5, %v1147_v13 }
 0x132   : > { %v1228_v40 = vpop.f32.mrf.mxu2 }
 0x133   : > { %v1205_v36 = vadd.f32 %v1204_v60, %v1176_v21 }
 0x134   : > { %v1207_v22 = vpop.f32.mrf.mxu1 }
 0x136   : > { %v1149_v19 = vpop.f32.mrf.mxu3 }
 0x137   : > { %v1150_v23 = vadd.f32 %v1149_v19, %v1121_v51  ;;  %v1171_v51 = vadd.f32 %v1170_v12, %v1142_v46  ;;  %v2318_v12 = vld [vmem:[%s3275_s3 + $0x18] sm:$0xff] }
 0x138   : > { %v3011_v24 = vpop.f32.mrf.mxu0  ;;  %1588 = vmatpush.bf16.msra.mxu1 %v2318_v12 }
 0x139   : > { %v3013_v25 = vadd.f32 %v1178_v20, %v1150_v23  ;;  %v1200_v57 = vadd.f32 %v1199_v38, %v1171_v51 }
 0x13a   : > { %v1231_v53 = vpop.f32.mrf.mxu2 }
 0x13b   : > { %v1229_v61 = vadd.f32 %v1228_v40, %v1200_v57  ;;  %v1232_v16 = vadd.f32 %v1231_v53, %v1203_v14 }
 0x13c   : > { %1589 = vmatpush.bf16.msra.mxu1 %v2317_v45 }
 0x13e   : > { %v3017_v11 = vpop.f32.mrf.mxu3 }
 0x140   : > { %v1183_v28 = vpop.f32.mrf.mxu0 }
 0x142   : > { %v1233_v8 = vpop.f32.mrf.mxu2 }
 0x143   : > { %v1234_v40 = vadd.f32 %v1233_v8, %v1205_v36 }
 0x146   : > { %v1154_v33 = vpop.f32.mrf.mxu3 }
 0x147   : > { %v1155_v34 = vadd.f32 %v1154_v33, %v1126_v63 }
 0x148   : > { %v3019_v35 = vpop.f32.mrf.mxu0 }
 0x149   : > { %v3023_v31 = vadd.f32 %v1183_v28, %v1155_v34  ;;  %v2316_v34 = vld [vmem:[%s3275_s3 + $0x8] sm:$0xff] }
 0x14a   : > { %v1236_v38 = vpop.f32.mrf.mxu2  ;;  %1590 = vmatpush.bf16.msra.mxu1 %v2316_v34 }
 0x14e   : > { %v3026_v42 = vpop.f32.mrf.mxu3  ;;  %1591 = vmatpush.bf16.msra.mxu1 %v2315_v48 }
 0x150   : > { %v1284_v43 = vpop.f32.mrf.mxu0 }
 0x156   : > { %v1255_v37 = vpop.f32.mrf.mxu3 }
 0x157   : > { %v1256_v54 = vadd.f32 %v1255_v37, %v1227_v49  ;;  %v1123_v37 = vadd.f32 %v3002_v55, %v2985_v30 }
 0x158   : > { %v1286_v41 = vpop.f32.mrf.mxu0 }
 0x159   : > { %v3033_v56 = vadd.f32 %v1284_v43, %v1256_v54  ;;  %v1209_v54 = vpop.f32.mrf.mxu1  ;;  %v1152_v59 = vadd.f32 %v3017_v11, %v1123_v37 }
 0x15b   : > { %v3039_v58 = vmul.f32 0.70710677, %v3033_v56  ;;  %v1181_v11 = vadd.f32 %v3011_v24, %v1152_v59 }
 0x15d   : > { %v1320_v62 = vand.u32 2147483647, %v3039_v58  ;;  %vm1472_vm3 = vcmp.ge.f32.partialorder %v3039_v58, 0.0 }
 0x15e   : > { %v1257_v63 = vpop.f32.mrf.mxu3 }
 0x15f   : > { %v1328_v0 = vmul.f32 0.3275911, %v1320_v62  ;;  %v1258_v1 = vadd.f32 %v1257_v63, %v1229_v61  ;;  %v1424_v27 = vsub.f32 0.0, %v1320_v62  ;;  %v1208_v63 = vadd.f32 %v1207_v22, %v3013_v25 }
 0x160   : > { %v1289_v2 = vpop.f32.mrf.mxu0 }
 0x161   : > { %v1336_v9 = vadd.f32 1.0, %v1328_v0  ;;  %v3046_v10 = vadd.f32 %v1286_v41, %v1258_v1  ;;  %v1432_v43 = vmul.f32 %v1424_v27, %v1320_v62  ;;  %v1237_v0 = vadd.f32 %v1236_v38, %v1208_v63  ;;  %v1238_v1 = vpop.f32.mrf.mxu2 }
 0x163   : > { %2468 = vrcp.f32 %v1336_v9  ;;  %v3052_v15 = vmul.f32 0.70710677, %v3046_v10  ;;  %v1440_v41 = vmul.f32 1.442695, %v1432_v43  ;;  %v1305_v58 = vmul.f32 0.5, %v3046_v10 }
 0x165   : > { %v1321_v4 = vand.u32 2147483647, %v3052_v15  ;;  %vm1473_vm4 = vcmp.ge.f32.partialorder %v3052_v15, 0.0 }
 0x166   : > { %v1260_v20 = vpop.f32.mrf.mxu3 }
 0x167   : > { %v1329_v19 = vmul.f32 0.3275911, %v1321_v4  ;;  %v1261_v23 = vadd.f32 %v1260_v20, %v1232_v16  ;;  %v1425_v52 = vsub.f32 0.0, %v1321_v4 }
 0x168   : > { %v1291_v18 = vpop.f32.mrf.mxu0 }
 0x169   : > { %v2469_v17 = vpop.eup %2468  ;;  %v1337_v28 = vadd.f32 1.0, %v1329_v19  ;;  %v3059_v29 = vadd.f32 %v1289_v2, %v1261_v23  ;;  %v1433_v2 = vmul.f32 %v1425_v52, %v1321_v4  ;;  %v1210_v4 = vadd.f32 %v1209_v54, %v1181_v11  ;;  %v1241_v37 = vpop.f32.mrf.mxu2 }
 0x16a   : > { %v1352_v33 = vmul.f32 1.0614054, %v2469_v17 }
 0x16b   : > { %2470 = vrcp.f32 %v1337_v28  ;;  %v3065_v5 = vmul.f32 0.70710677, %v3059_v29  ;;  %v1442_v45 = vmul.f32 1.442695, %v1433_v2  ;;  %v1128_v28 = vadd.f32 %v3015_v7, %v2997_v26 }
 0x16c   : > { %v1360_v39 = vadd.f32 -1.4531521, %v1352_v33  ;;  %v1212_v33 = vpop.f32.mrf.mxu1  ;;  %v1239_v36 = vadd.f32 %v1238_v1, %v1210_v4 }
 0x16d   : > { %v1322_v44 = vand.u32 2147483647, %v3065_v5  ;;  %v1213_v1 = vadd.f32 %v1212_v33, %v3023_v31  ;;  %vm1474_vm5 = vcmp.ge.f32.partialorder %v3065_v5, 0.0 }
 0x16e   : > { %v1368_v46 = vmul.f32 %v2469_v17, %v1360_v39  ;;  %v1262_v47 = vpop.f32.mrf.mxu3 }
 0x16f   : > { %v1330_v49 = vmul.f32 0.3275911, %v1322_v44  ;;  %v1263_v50 = vadd.f32 %v1262_v47, %v1234_v40  ;;  %v1426_v21 = vsub.f32 0.0, %v1322_v44 }
 0x170   : > { %v1376_v51 = vadd.f32 1.4214138, %v1368_v46  ;;  %v1294_v62 = vpop.f32.mrf.mxu0 }
 0x171   : > { %v3073_v53 = vpop.eup %2470  ;;  %v1338_v32 = vadd.f32 1.0, %v1330_v49  ;;  %v3075_v57 = vadd.f32 %v1291_v18, %v1263_v50  ;;  %v1157_v50 = vadd.f32 %v3026_v42, %v1128_v28  ;;  %v1243_v33 = vpop.f32.mrf.mxu2 }
 0x172   : > { %v1384_v60 = vmul.f32 %v2469_v17, %v1376_v51  ;;  %v1353_v61 = vmul.f32 1.0614054, %v3073_v53 }
 0x173   : > { %2472 = vrcp.f32 %v1338_v32  ;;  %v3081_v30 = vmul.f32 0.70710677, %v3075_v57 }
 0x174   : > { %v1392_v55 = vadd.f32 -0.28449672, %v1384_v60  ;;  %v1361_v3 = vadd.f32 -1.4531521, %v1353_v61  ;;  %2474 = vpow2.f32 %v1440_v41 }
 0x175   : > { %v1323_v6 = vand.u32 2147483647, %v3081_v30  ;;  %vm1475_vm6 = vcmp.ge.f32.partialorder %v3081_v30, 0.0 }
 0x176   : > { %v1400_v8 = vmul.f32 %v2469_v17, %v1392_v55  ;;  %v1369_v9 = vmul.f32 %v3073_v53, %v1361_v3  ;;  %v1265_v12 = vpop.f32.mrf.mxu3 }
 0x177   : > { %v1331_v13 = vmul.f32 0.3275911, %v1323_v6  ;;  %v1266_v25 = vadd.f32 %v1265_v12, %v1237_v0  ;;  %v1427_v46 = vsub.f32 0.0, %v1323_v6  ;;  %v1186_v0 = vadd.f32 %v3019_v35, %v1157_v50 }
 0x178   : > { %v1408_v14 = vadd.f32 0.2548296, %v1400_v8  ;;  %v1377_v16 = vadd.f32 1.4214138, %v1369_v9  ;;  %v1296_v40 = vpop.f32.mrf.mxu0  ;;  %v1214_v9 = vpop.f32.mrf.mxu1 }
 0x179   : > { %v3086_v20 = vpop.eup %2472  ;;  %v1339_v22 = vadd.f32 1.0, %v1331_v13  ;;  %v3088_v19 = vadd.f32 %v1294_v62, %v1266_v25  ;;  %v1435_v59 = vmul.f32 %v1427_v46, %v1323_v6 }
 0x17a   : > { %v1416_v23 = vmul.f32 %v2469_v17, %v1408_v14  ;;  %v1385_v18 = vmul.f32 %v3073_v53, %v1377_v16  ;;  %v1354_v24 = vmul.f32 1.0614054, %v3086_v20  ;;  %v2475_v27 = vpop.eup %2474  ;;  %v1434_v17 = vmul.f32 %v1426_v21, %v1322_v44 }
 0x17b   : > { %2476 = vrcp.f32 %v1339_v22  ;;  %v3095_v34 = vmul.f32 0.70710677, %v3088_v19  ;;  %v1446_v12 = vmul.f32 1.442695, %v1435_v59  ;;  %v1215_v21 = vadd.f32 %v1214_v9, %v1186_v0 }
 0x17c   : > { %v1456_v38 = vmul.f32 %v2475_v27, %v1416_v23  ;;  %v1393_v39 = vadd.f32 -0.28449672, %v1385_v18  ;;  %v1362_v43 = vadd.f32 -1.4531521, %v1354_v24  ;;  %2478 = vpow2.f32 %v1442_v45 }
 0x17d   : > { %v3098_v47 = vand.u32 2147483647, %v3095_v34  ;;  %v1444_v44 = vmul.f32 1.442695, %v1434_v17  ;;  %v1304_v45 = vmul.f32 0.5, %v3033_v56  ;;  %vm1476_vm7 = vcmp.ge.f32.partialorder %v3095_v34, 0.0 }
 0x17e   : > { %v1464_v48 = vsub.f32 1.0, %v1456_v38  ;;  %v1401_v49 = vmul.f32 %v3073_v53, %v1393_v39  ;;  %v1267_v26 = vpop.f32.mrf.mxu3  ;;  %v1370_v7 = vmul.f32 %v3086_v20, %v1362_v43 }
 0x17f   : > { %v1332_v51 = vmul.f32 0.3275911, %v3098_v47  ;;  %v1268_v54 = vadd.f32 %v1267_v26, %v1239_v36  ;;  %v1428_v17 = vsub.f32 0.0, %v3098_v47 }
 0x180   : > { %v1409_v41 = vadd.f32 0.2548296, %v1401_v49  ;;  %v1378_v52 = vadd.f32 1.4214138, %v1370_v7  ;;  %v1480_v62 = vsub.f32 0.0, %v1464_v48  ;;  %v1299_v35 = vpop.f32.mrf.mxu0  ;;  %v1244_v49 = vadd.f32 %v1243_v33, %v1215_v21 }
 0x181   : > { %v3104_v32 = vpop.eup %2476  ;;  %v1340_v60 = vadd.f32 1.0, %v1332_v51  ;;  %v3106_v61 = vadd.f32 %v1296_v40, %v1268_v54 }
 0x182   : > { %v1417_v63 = vmul.f32 %v3073_v53, %v1409_v41  ;;  %v1355_v55 = vmul.f32 1.0614054, %v3104_v32  ;;  %v1386_v42 = vmul.f32 %v3086_v20, %v1378_v52  ;;  %v2479_v3 = vpop.eup %2478  ;;  %v1242_v53 = vadd.f32 %v1241_v37, %v1213_v1 }
 0x183   : > { %2480 = vrcp.f32 %v1340_v60  ;;  %v3114_v11 = vmul.f32 0.70710677, %v3106_v61  ;;  %v1488_v13 = vsel %vm1472_vm3, %v1464_v48, %v1480_v62 }
 0x184   : > { %v1457_v2 = vmul.f32 %v2479_v3, %v1417_v63  ;;  %v1363_v6 = vadd.f32 -1.4531521, %v1355_v55  ;;  %v1394_v8 = vadd.f32 -0.28449672, %v1386_v42  ;;  %2482 = vpow2.f32 %v1444_v44 }
 0x185   : > { %v3118_v14 = vand.u32 2147483647, %v3114_v11  ;;  %v1496_v28 = vadd.f32 1.0, %v1488_v13  ;;  %2484 = vpow2.f32 %v1446_v12  ;;  %v1436_v44 = vmul.f32 %v1428_v17, %v3098_v47 }
 0x186   : > { %v1465_v25 = vsub.f32 1.0, %v1457_v2  ;;  %v1270_v31 = vpop.f32.mrf.mxu3  ;;  %v1371_v16 = vmul.f32 %v3104_v32, %v1363_v6  ;;  %v1402_v4 = vmul.f32 %v3086_v20, %v1394_v8  ;;  %vm1477_vm8 = vcmp.ge.f32.partialorder %v3114_v11, 0.0 }
 0x187   : > { %v1271_v22 = vadd.f32 %v1270_v31, %v1242_v53  ;;  %v1333_v18 = vmul.f32 0.3275911, %v3118_v14  ;;  %v1504_v7 = vmul.f32 %v1496_v28, %v1304_v45  ;;  %v1448_v53 = vmul.f32 1.442695, %v1436_v44 }
 0x188   : > { %v1481_v23 = vsub.f32 0.0, %v1465_v25  ;;  %v1379_v24 = vadd.f32 1.4214138, %v1371_v16  ;;  %v1410_v38 = vadd.f32 0.2548296, %v1402_v4  ;;  %v1301_v63 = vpop.f32.mrf.mxu0  ;;  %v1429_v47 = vsub.f32 0.0, %v3118_v14 }
 0x189   : > { %v3125_v27 = vpop.eup %2480  ;;  %v3128_v36 = vadd.f32 %v1299_v35, %v1271_v22  ;;  %v1341_v39 = vadd.f32 1.0, %v1333_v18 }
 0x18a   : > { %v1489_v56 = vsel %vm1473_vm4, %v1465_v25, %v1481_v23  ;;  %v1387_v40 = vmul.f32 %v3104_v32, %v1379_v24  ;;  %v2483_v43 = vpop.eup %2482  ;;  %v1418_v48 = vmul.f32 %v3086_v20, %v1410_v38  ;;  %v1356_v26 = vmul.f32 1.0614054, %v3125_v27 }
 0x18b   : > { %v1497_v10 = vadd.f32 1.0, %v1489_v56  ;;  %v3133_v46 = vmul.f32 0.70710677, %v3128_v36  ;;  %2486 = vrcp.f32 %v1341_v39  ;;  %v2485_v20 = vpop.eup %2484  ;;  %v1437_v22 = vmul.f32 %v1429_v47, %v3118_v14 }
 0x18c   : > { %v1395_v15 = vadd.f32 -0.28449672, %v1387_v40  ;;  %v1458_v51 = vmul.f32 %v2483_v43, %v1418_v48  ;;  %v1364_v52 = vadd.f32 -1.4531521, %v1356_v26 }
 0x18d   : > { %v1505_v50 = vmul.f32 %v1497_v10, %v1305_v58  ;;  %v1326_v37 = vand.u32 2147483647, %v3133_v46  ;;  %v1306_v58 = vmul.f32 0.5, %v3059_v29  ;;  %v1307_v10 = vmul.f32 0.5, %v3075_v57 }
 0x18e   : > { %v1272_v54 = vpop.f32.mrf.mxu3  ;;  %v1403_v41 = vmul.f32 %v3104_v32, %v1395_v15  ;;  %v1466_v42 = vsub.f32 1.0, %v1458_v51  ;;  %v1372_v3 = vmul.f32 %v3125_v27, %v1364_v52  ;;  %v1450_v14 = vmul.f32 1.442695, %v1437_v22 }
 0x18f   : > { %v1334_v59 = vmul.f32 0.3275911, %v1326_v37  ;;  %v1273_v60 = vadd.f32 %v1272_v54, %v1244_v49  ;;  %v1512_v62 = vpack.c.bf16 %v1505_v50, %v1504_v7  ;;  %v1430_v5 = vsub.f32 0.0, %v1326_v37 }
 0x190   : > { %v1411_v55 = vadd.f32 0.2548296, %v1403_v41  ;;  %v1482_v8 = vsub.f32 0.0, %v1466_v42  ;;  %v1380_v9 = vadd.f32 1.4214138, %v1372_v3  ;;  %vm1478_vm9 = vcmp.ge.f32.partialorder %v3133_v46, 0.0 }
 0x191   : > { %v1342_v0 = vadd.f32 1.0, %v1334_v59  ;;  %v3141_v1 = vadd.f32 %v1301_v63, %v1273_v60  ;;  %1592 = vmatmul.bf16.vlgmr.msra.gmra.mxu1 %v1512_v62  ;;  %v2487_v2 = vpop.eup %2486  ;;  %v1438_v26 = vmul.f32 %v1430_v5, %v1326_v37  ;;  %v3168_v46 = vld [vmem:[%s3276_s4] ss:$0 sm:$0xff] }
 0x192   : > { %v1419_v6 = vmul.f32 %v3104_v32, %v1411_v55  ;;  %v1357_v25 = vmul.f32 1.0614054, %v2487_v2  ;;  %v1388_v35 = vmul.f32 %v3125_v27, %v1380_v9  ;;  %v1490_v45 = vsel %vm1474_vm5, %v1466_v42, %v1482_v8 }
 0x193   : > { %2488 = vrcp.f32 %v1342_v0  ;;  %v3146_v12 = vmul.f32 0.70710677, %v3141_v1  ;;  %v1498_v38 = vadd.f32 1.0, %v1490_v45  ;;  %v1452_v60 = vmul.f32 1.442695, %v1438_v26 }
 0x194   : > { %v1459_v13 = vmul.f32 %v2485_v20, %v1419_v6  ;;  %v1365_v32 = vadd.f32 -1.4531521, %v1357_v25  ;;  %v1396_v21 = vadd.f32 -0.28449672, %v1388_v35  ;;  %2490 = vpow2.f32 %v1448_v53 }
 0x195   : > { %v1327_v31 = vand.u32 2147483647, %v3146_v12  ;;  %v1506_v7 = vmul.f32 %v1498_v38, %v1306_v58  ;;  %vm1479_vm10 = vcmp.ge.f32.partialorder %v3146_v12, 0.0 }
 0x196   : > { %v1467_v16 = vsub.f32 1.0, %v1459_v13  ;;  %v1373_v18 = vmul.f32 %v2487_v2, %v1365_v32  ;;  %v1404_v24 = vmul.f32 %v3125_v27, %v1396_v21 }
 0x197   : > { %v1335_v4 = vmul.f32 0.3275911, %v1327_v31  ;;  %v1431_v62 = vsub.f32 0.0, %v1327_v31 }
 0x198   : > { %v1483_v23 = vsub.f32 0.0, %v1467_v16  ;;  %v1381_v39 = vadd.f32 1.4214138, %v1373_v18  ;;  %v1412_v40 = vadd.f32 0.2548296, %v1404_v24  ;;  %v1309_v18 = vmul.f32 0.5, %v3106_v61 }
 0x199   : > { %v2489_v28 = vpop.eup %2488  ;;  %v1343_v33 = vadd.f32 1.0, %v1335_v4  ;;  %v1439_v6 = vmul.f32 %v1431_v62, %v1327_v31 }
 0x19a   : > { %v1491_v56 = vsel %vm1475_vm6, %v1467_v16, %v1483_v23  ;;  %v1358_v43 = vmul.f32 1.0614054, %v2489_v28  ;;  %v1389_v29 = vmul.f32 %v2487_v2, %v1381_v39  ;;  %v1420_v48 = vmul.f32 %v3125_v27, %v1412_v40  ;;  %v2491_v15 = vpop.eup %2490 }
 0x19b   : > { %2492 = vrcp.f32 %v1343_v33  ;;  %v1499_v17 = vadd.f32 1.0, %v1491_v56  ;;  %v1454_v16 = vmul.f32 1.442695, %v1439_v6  ;;  %v1308_v23 = vmul.f32 0.5, %v3088_v19 }
 0x19c   : > { %v1366_v49 = vadd.f32 -1.4531521, %v1358_v43  ;;  %v1397_v50 = vadd.f32 -0.28449672, %v1389_v29  ;;  %v1460_v51 = vmul.f32 %v2491_v15, %v1420_v48  ;;  %2494 = vpow2.f32 %v1450_v14 }
 0x19d   : > { %v1507_v30 = vmul.f32 %v1499_v17, %v1307_v10  ;;  %2496 = vpow2.f32 %v1452_v60  ;;  %v1310_v29 = vmul.f32 0.5, %v3128_v36  ;;  %v1311_v48 = vmul.f32 0.5, %v3141_v1 }
 0x19e   : > { %v1374_v54 = vmul.f32 %v2489_v28, %v1366_v49  ;;  %v1405_v52 = vmul.f32 %v2487_v2, %v1397_v50  ;;  %v1468_v44 = vsub.f32 1.0, %v1460_v51  ;;  %2498 = vpow2.f32 %v1454_v16 }
 0x19f   : > { %v1513_v41 = vpack.c.bf16 %v1507_v30, %v1506_v7 }
 0x1a0   : > { %v1382_v59 = vadd.f32 1.4214138, %v1374_v54  ;;  %v1413_v20 = vadd.f32 0.2548296, %v1405_v52  ;;  %v1484_v42 = vsub.f32 0.0, %v1468_v44 }
 0x1a1   : > { %v2493_v57 = vpop.eup %2492  ;;  %1597 = vmatmul.bf16.gmra.mxu1 %v1513_v41 }
 0x1a2   : > { %v1359_v63 = vmul.f32 1.0614054, %v2493_v57  ;;  %v1390_v27 = vmul.f32 %v2489_v28, %v1382_v59  ;;  %v1421_v55 = vmul.f32 %v2487_v2, %v1413_v20  ;;  %v2495_v0 = vpop.eup %2494  ;;  %v1492_v13 = vsel %vm1476_vm7, %v1468_v44, %v1484_v42 }
 0x1a3   : > { %v2497_v2 = vpop.eup %2496  ;;  %v1500_v22 = vadd.f32 1.0, %v1492_v13 }
 0x1a4   : > { %v1367_v37 = vadd.f32 -1.4531521, %v1359_v63  ;;  %v1398_v3 = vadd.f32 -0.28449672, %v1390_v27  ;;  %v1461_v8 = vmul.f32 %v2495_v0, %v1421_v55  ;;  %v2499_v43 = vpop.eup %2498 }
 0x1a5   : > { %v1508_v33 = vmul.f32 %v1500_v22, %v1308_v23 }
 0x1a6   : > { %v1375_v9 = vmul.f32 %v2493_v57, %v1367_v37  ;;  %v1406_v53 = vmul.f32 %v2489_v28, %v1398_v3  ;;  %v1469_v47 = vsub.f32 1.0, %v1461_v8 }
 0x1a8   : > { %v1383_v25 = vadd.f32 1.4214138, %v1375_v9  ;;  %v1414_v35 = vadd.f32 0.2548296, %v1406_v53  ;;  %v1485_v45 = vsub.f32 0.0, %v1469_v47 }
 0x1aa   : > { %v1391_v32 = vmul.f32 %v2493_v57, %v1383_v25  ;;  %v1422_v21 = vmul.f32 %v2489_v28, %v1414_v35  ;;  %v1493_v4 = vsel %vm1477_vm8, %v1469_v47, %v1485_v45 }
 0x1ab   : > { %v1501_v34 = vadd.f32 1.0, %v1493_v4 }
 0x1ac   : > { %v1399_v58 = vadd.f32 -0.28449672, %v1391_v32  ;;  %v1462_v31 = vmul.f32 %v2497_v2, %v1422_v21 }
 0x1ad   : > { %v1509_v38 = vmul.f32 %v1501_v34, %v1309_v18 }
 0x1ae   : > { %v1407_v24 = vmul.f32 %v2493_v57, %v1399_v58  ;;  %v1470_v5 = vsub.f32 1.0, %v1462_v31 }
 0x1af   : > { %v1514_v39 = vpack.c.bf16 %v1509_v38, %v1508_v33 }
 0x1b0   : > { %v1415_v56 = vadd.f32 0.2548296, %v1407_v24  ;;  %v1486_v40 = vsub.f32 0.0, %v1470_v5 }
 0x1b1   : > { %1602 = vmatmul.bf16.gmra.mxu1 %v1514_v39 }
 0x1b2   : > { %v1423_v28 = vmul.f32 %v2493_v57, %v1415_v56  ;;  %v1494_v14 = vsel %vm1478_vm9, %v1470_v5, %v1486_v40 }
 0x1b3   : > { %v1502_v61 = vadd.f32 1.0, %v1494_v14 }
 0x1b4   : > { %v1463_v11 = vmul.f32 %v2499_v43, %v1423_v28 }
 0x1b5   : > { %v1510_v15 = vmul.f32 %v1502_v61, %v1310_v29 }
 0x1b6   : > { %v1471_v10 = vsub.f32 1.0, %v1463_v11 }
 0x1b8   : > { %v1487_v19 = vsub.f32 0.0, %v1471_v10 }
 0x1ba   : > { %v1495_v17 = vsel %vm1479_vm10, %v1471_v10, %v1487_v19 }
 0x1bb   : > { %v1503_v49 = vadd.f32 1.0, %v1495_v17 }
 0x1bd   : > { %v1511_v26 = vmul.f32 %v1503_v49, %v1311_v48 }
 0x1bf   : > { %v1515_v7 = vpack.c.bf16 %v1511_v26, %v1510_v15 }
 0x1c1   : > { %1607 = vmatmul.bf16.gmra.mxu1 %v1515_v7 }
 0x20e   : > { %v1593_v30 = vpop.f32.mrf.mxu1 }
 0x20f   : > { %v3171_v50 = vadd.f32 %v3168_v46, %v1593_v30 }
 0x211   : > { %v3174_v12 = vmul.f32 0.70710677, %v3171_v50 }
 0x213   : > { %v1629_v36 = vand.u32 2147483647, %v3174_v12  ;;  %vm1781_vm11 = vcmp.ge.f32.partialorder %v3174_v12, 0.0 }
 0x215   : > { %v1637_v1 = vmul.f32 0.3275911, %v1629_v36  ;;  %v1733_v62 = vsub.f32 0.0, %v1629_v36 }
 0x216   : > { %v1595_v51 = vpop.f32.mrf.mxu1 }
 0x217   : > { %v1645_v54 = vadd.f32 1.0, %v1637_v1  ;;  %v3178_v41 = vadd.f32 %v3168_v46, %v1595_v51  ;;  %v1741_v37 = vmul.f32 %v1733_v62, %v1629_v36 }
 0x219   : > { %2500 = vrcp.f32 %v1645_v54  ;;  %v3181_v52 = vmul.f32 0.70710677, %v3178_v41  ;;  %v1749_v47 = vmul.f32 1.442695, %v1741_v37 }
 0x21b   : > { %v1630_v44 = vand.u32 2147483647, %v3181_v52  ;;  %vm1782_vm12 = vcmp.ge.f32.partialorder %v3181_v52, 0.0 }
 0x21d   : > { %v1638_v59 = vmul.f32 0.3275911, %v1630_v44  ;;  %v1734_v13 = vsub.f32 0.0, %v1630_v44 }
 0x21e   : > { %v1598_v57 = vpop.f32.mrf.mxu1 }
 0x21f   : > { %v2501_v60 = vpop.eup %2500  ;;  %v1646_v20 = vadd.f32 1.0, %v1638_v59  ;;  %v3185_v63 = vadd.f32 %v3168_v46, %v1598_v57  ;;  %v1742_v22 = vmul.f32 %v1734_v13, %v1630_v44 }
 0x220   : > { %v1661_v27 = vmul.f32 1.0614054, %v2501_v60 }
 0x221   : > { %2502 = vrcp.f32 %v1646_v20  ;;  %v3188_v55 = vmul.f32 0.70710677, %v3185_v63  ;;  %v1751_v33 = vmul.f32 1.442695, %v1742_v22 }
 0x222   : > { %v1669_v42 = vadd.f32 -1.4531521, %v1661_v27  ;;  %v1613_v27 = vmul.f32 0.5, %v3171_v50 }
 0x223   : > { %v1631_v3 = vand.u32 2147483647, %v3188_v55  ;;  %vm1783_vm13 = vcmp.ge.f32.partialorder %v3188_v55, 0.0 }
 0x224   : > { %v1677_v0 = vmul.f32 %v2501_v60, %v1669_v42 }
 0x225   : > { %v1639_v6 = vmul.f32 0.3275911, %v1631_v3  ;;  %v1735_v23 = vsub.f32 0.0, %v1631_v3 }
 0x226   : > { %v1685_v8 = vadd.f32 1.4214138, %v1677_v0  ;;  %v1600_v9 = vpop.f32.mrf.mxu1 }
 0x227   : > { %v2503_v53 = vpop.eup %2502  ;;  %v1647_v25 = vadd.f32 1.0, %v1639_v6  ;;  %v3192_v35 = vadd.f32 %v3168_v46, %v1600_v9  ;;  %v1743_v11 = vmul.f32 %v1735_v23, %v1631_v3 }
 0x228   : > { %v1693_v16 = vmul.f32 %v2501_v60, %v1685_v8  ;;  %v1662_v45 = vmul.f32 1.0614054, %v2503_v53 }
 0x229   : > { %2504 = vrcp.f32 %v1647_v25  ;;  %v3195_v32 = vmul.f32 0.70710677, %v3192_v35  ;;  %v1753_v15 = vmul.f32 1.442695, %v1743_v11 }
 0x22a   : > { %v1701_v21 = vadd.f32 -0.28449672, %v1693_v16  ;;  %v1670_v2 = vadd.f32 -1.4531521, %v1662_v45  ;;  %2506 = vpow2.f32 %v1749_v47 }
 0x22b   : > { %v1632_v4 = vand.u32 2147483647, %v3195_v32  ;;  %vm1784_vm14 = vcmp.ge.f32.partialorder %v3195_v32, 0.0 }
 0x22c   : > { %v1709_v58 = vmul.f32 %v2501_v60, %v1701_v21  ;;  %v1678_v31 = vmul.f32 %v2503_v53, %v1670_v2 }
 0x22d   : > { %v1640_v18 = vmul.f32 0.3275911, %v1632_v4  ;;  %v1736_v51 = vsub.f32 0.0, %v1632_v4 }
 0x22e   : > { %v1717_v34 = vadd.f32 0.2548296, %v1709_v58  ;;  %v1686_v24 = vadd.f32 1.4214138, %v1678_v31  ;;  %v1603_v40 = vpop.f32.mrf.mxu1 }
 0x22f   : > { %v2505_v5 = vpop.eup %2504  ;;  %v1648_v38 = vadd.f32 1.0, %v1640_v18  ;;  %v3199_v10 = vadd.f32 %v3168_v46, %v1603_v40  ;;  %v1744_v9 = vmul.f32 %v1736_v51, %v1632_v4  ;;  %v1614_v4 = vmul.f32 0.5, %v3178_v41 }
 0x230   : > { %v1725_v56 = vmul.f32 %v2501_v60, %v1717_v34  ;;  %v1694_v39 = vmul.f32 %v2503_v53, %v1686_v24  ;;  %v1663_v28 = vmul.f32 1.0614054, %v2505_v5  ;;  %v2507_v43 = vpop.eup %2506 }
 0x231   : > { %2508 = vrcp.f32 %v1648_v38  ;;  %v3202_v17 = vmul.f32 0.70710677, %v3199_v10  ;;  %v1755_v21 = vmul.f32 1.442695, %v1744_v9 }
 0x232   : > { %v1765_v14 = vmul.f32 %v2507_v43, %v1725_v56  ;;  %v1702_v19 = vadd.f32 -0.28449672, %v1694_v39  ;;  %v1671_v61 = vadd.f32 -1.4531521, %v1663_v28  ;;  %2510 = vpow2.f32 %v1751_v33 }
 0x233   : > { %v1633_v26 = vand.u32 2147483647, %v3202_v17  ;;  %2512 = vpow2.f32 %v1753_v15  ;;  %vm1785_vm15 = vcmp.ge.f32.partialorder %v3202_v17, 0.0 }
 0x234   : > { %v1773_v29 = vsub.f32 1.0, %v1765_v14  ;;  %v1710_v48 = vmul.f32 %v2503_v53, %v1702_v19  ;;  %v1679_v49 = vmul.f32 %v2505_v5, %v1671_v61 }
 0x235   : > { %v1641_v54 = vmul.f32 0.3275911, %v1633_v26  ;;  %v1737_v33 = vsub.f32 0.0, %v1633_v26 }
 0x236   : > { %v1789_v7 = vsub.f32 0.0, %v1773_v29  ;;  %v1718_v30 = vadd.f32 0.2548296, %v1710_v48  ;;  %v1687_v36 = vadd.f32 1.4214138, %v1679_v49  ;;  %v1605_v62 = vpop.f32.mrf.mxu1 }
 0x237   : > { %v3205_v1 = vpop.eup %2508  ;;  %v1649_v37 = vadd.f32 1.0, %v1641_v54  ;;  %v3212_v3 = vadd.f32 %v3168_v46, %v1605_v62  ;;  %v1745_v19 = vmul.f32 %v1737_v33, %v1633_v26 }
 0x238   : > { %v1797_v44 = vsel %vm1781_vm11, %v1773_v29, %v1789_v7  ;;  %v1726_v59 = vmul.f32 %v2503_v53, %v1718_v30  ;;  %v1695_v57 = vmul.f32 %v2505_v5, %v1687_v36  ;;  %v1664_v60 = vmul.f32 1.0614054, %v3205_v1  ;;  %v2511_v20 = vpop.eup %2510 }
 0x239   : > { %v1805_v42 = vadd.f32 1.0, %v1797_v44  ;;  %2514 = vrcp.f32 %v1649_v37  ;;  %v3221_v13 = vmul.f32 0.70710677, %v3212_v3  ;;  %v2513_v22 = vpop.eup %2512  ;;  %v1615_v44 = vmul.f32 0.5, %v3185_v63 }
 0x23a   : > { %v1766_v12 = vmul.f32 %v2511_v20, %v1726_v59  ;;  %v1703_v0 = vadd.f32 -0.28449672, %v1695_v57  ;;  %v1672_v6 = vadd.f32 -1.4531521, %v1664_v60  ;;  %2516 = vpow2.f32 %v1755_v21 }
 0x23b   : > { %v1813_v8 = vmul.f32 %v1805_v42, %v1613_v27  ;;  %v1634_v2 = vand.u32 2147483647, %v3221_v13  ;;  %v1757_v26 = vmul.f32 1.442695, %v1745_v19  ;;  %vm1786_vm0 = vcmp.ge.f32.partialorder %v3221_v13, 0.0 }
 0x23c   : > { %v1774_v53 = vsub.f32 1.0, %v1766_v12  ;;  %v1711_v50 = vmul.f32 %v2505_v5, %v1703_v0  ;;  %v1680_v47 = vmul.f32 %v3205_v1, %v1672_v6 }
 0x23d   : > { %1821 = vst [vmem:[%s3217_s8] sm:$0xff] %v1813_v8  ;;  %v1642_v38 = vmul.f32 0.3275911, %v1634_v2  ;;  %v1738_v42 = vsub.f32 0.0, %v1634_v2 }
 0x23e   : > { %v1790_v25 = vsub.f32 0.0, %v1774_v53  ;;  %v1719_v16 = vadd.f32 0.2548296, %v1711_v50  ;;  %v1688_v45 = vadd.f32 1.4214138, %v1680_v47  ;;  %v1608_v18 = vpop.f32.mrf.mxu1 }
 0x23f   : > { %v2515_v34 = vpop.eup %2514  ;;  %v3229_v56 = vadd.f32 %v3168_v46, %v1608_v18  ;;  %v1650_v43 = vadd.f32 1.0, %v1642_v38  ;;  %v1746_v9 = vmul.f32 %v1738_v42, %v1634_v2 }
 0x240   : > { %v1798_v58 = vsel %vm1782_vm12, %v1774_v53, %v1790_v25  ;;  %v1727_v31 = vmul.f32 %v2505_v5, %v1719_v16  ;;  %v1696_v23 = vmul.f32 %v3205_v1, %v1688_v45  ;;  %v1665_v28 = vmul.f32 1.0614054, %v2515_v34  ;;  %v2517_v54 = vpop.eup %2516 }
 0x241   : > { %v1806_v24 = vadd.f32 1.0, %v1798_v58  ;;  %v3233_v14 = vmul.f32 0.70710677, %v3229_v56  ;;  %2518 = vrcp.f32 %v1650_v43  ;;  %v1616_v16 = vmul.f32 0.5, %v3192_v35 }
 0x242   : > { %v1767_v52 = vmul.f32 %v2513_v22, %v1727_v31  ;;  %v1704_v39 = vadd.f32 -0.28449672, %v1696_v23  ;;  %v1673_v11 = vadd.f32 -1.4531521, %v1665_v28 }
 0x243   : > { %v1814_v40 = vmul.f32 %v1806_v24, %v1614_v4  ;;  %v1635_v49 = vand.u32 2147483647, %v3233_v14  ;;  %v1759_v24 = vmul.f32 1.442695, %v1746_v9  ;;  %vm1787_vm1 = vcmp.ge.f32.partialorder %v3233_v14, 0.0 }
 0x244   : > { %v1775_v41 = vsub.f32 1.0, %v1767_v52  ;;  %v1712_v5 = vmul.f32 %v3205_v1, %v1704_v39  ;;  %v1681_v48 = vmul.f32 %v2515_v34, %v1673_v11 }
 0x245   : > { %1822 = vst [vmem:[%s3217_s8 + $0x8] sm:$0xff] %v1814_v40  ;;  %v1643_v36 = vmul.f32 0.3275911, %v1635_v49  ;;  %v1739_v31 = vsub.f32 0.0, %v1635_v49 }
 0x246   : > { %v1791_v61 = vsub.f32 0.0, %v1775_v41  ;;  %v1720_v29 = vadd.f32 0.2548296, %v1712_v5  ;;  %v1689_v30 = vadd.f32 1.4214138, %v1681_v48  ;;  %v1610_v51 = vpop.f32.mrf.mxu1  ;;  %v1617_v48 = vmul.f32 0.5, %v3199_v10 }
 0x247   : > { %v3241_v57 = vadd.f32 %v3168_v46, %v1610_v51  ;;  %v1651_v20 = vadd.f32 1.0, %v1643_v36  ;;  %v2519_v27 = vpop.eup %2518  ;;  %v1747_v28 = vmul.f32 %v1739_v31, %v1635_v49 }
 0x248   : > { %v1799_v15 = vsel %vm1783_vm13, %v1775_v41, %v1791_v61  ;;  %v1728_v7 = vmul.f32 %v3205_v1, %v1720_v29  ;;  %v1697_v62 = vmul.f32 %v2515_v34, %v1689_v30  ;;  %v1666_v0 = vmul.f32 1.0614054, %v2519_v27 }
 0x249   : > { %v1807_v59 = vadd.f32 1.0, %v1799_v15  ;;  %v3244_v1 = vmul.f32 0.70710677, %v3241_v57  ;;  %2520 = vrcp.f32 %v1651_v20  ;;  %v1761_v61 = vmul.f32 1.442695, %v1747_v28 }
 0x24a   : > { %v1768_v60 = vmul.f32 %v2517_v54, %v1728_v7  ;;  %v1705_v12 = vadd.f32 -0.28449672, %v1697_v62  ;;  %2522 = vpow2.f32 %v1757_v26  ;;  %v1674_v8 = vadd.f32 -1.4531521, %v1666_v0 }
 0x24b   : > { %v1815_v55 = vmul.f32 %v1807_v59, %v1615_v44  ;;  %v1636_v63 = vand.u32 2147483647, %v3244_v1  ;;  %vm1788_vm2 = vcmp.ge.f32.partialorder %v3244_v1, 0.0 }
 0x24c   : > { %v1776_v37 = vsub.f32 1.0, %v1768_v60  ;;  %v1713_v46 = vmul.f32 %v2515_v34, %v1705_v12  ;;  %v1682_v25 = vmul.f32 %v2519_v27, %v1674_v8 }
 0x24d   : > { %1823 = vst [vmem:[%s3217_s8 + $0x10] sm:$0xff] %v1815_v55  ;;  %v1644_v53 = vmul.f32 0.3275911, %v1636_v63  ;;  %v1740_v5 = vsub.f32 0.0, %v1636_v63 }
 0x24e   : > { %v1792_v6 = vsub.f32 0.0, %v1776_v37  ;;  %v1721_v47 = vadd.f32 0.2548296, %v1713_v46  ;;  %v1690_v58 = vadd.f32 1.4214138, %v1682_v25 }
 0x24f   : > { %v1652_v21 = vadd.f32 1.0, %v1644_v53  ;;  %v2521_v22 = vpop.eup %2520  ;;  %v1748_v44 = vmul.f32 %v1740_v5, %v1636_v63  ;;  %v1618_v63 = vmul.f32 0.5, %v3212_v3 }
 0x250   : > { %v1800_v50 = vsel %vm1784_vm14, %v1776_v37, %v1792_v6  ;;  %v1729_v4 = vmul.f32 %v2515_v34, %v1721_v47  ;;  %v2523_v23 = vpop.eup %2522  ;;  %v1667_v33 = vmul.f32 1.0614054, %v2521_v22  ;;  %v1698_v2 = vmul.f32 %v2519_v27, %v1690_v58 }
 0x251   : > { %v1808_v45 = vadd.f32 1.0, %v1800_v50  ;;  %2524 = vrcp.f32 %v1652_v21  ;;  %v1763_v55 = vmul.f32 1.442695, %v1748_v44 }
 0x252   : > { %v1769_v32 = vmul.f32 %v2523_v23, %v1729_v4  ;;  %v1675_v38 = vadd.f32 -1.4531521, %v1667_v33  ;;  %v1706_v39 = vadd.f32 -0.28449672, %v1698_v2  ;;  %2526 = vpow2.f32 %v1759_v24 }
 0x253   : > { %v1816_v18 = vmul.f32 %v1808_v45, %v1616_v16  ;;  %2528 = vpow2.f32 %v1761_v61  ;;  %v1619_v45 = vmul.f32 0.5, %v3229_v56  ;;  %v1620_v23 = vmul.f32 0.5, %v3241_v57 }
 0x254   : > { %v1777_v52 = vsub.f32 1.0, %v1769_v32  ;;  %v1683_v35 = vmul.f32 %v2521_v22, %v1675_v38  ;;  %v1714_v43 = vmul.f32 %v2519_v27, %v1706_v39  ;;  %2530 = vpow2.f32 %v1763_v55 }
 0x255   : > { %1824 = vst [vmem:[%s3217_s8 + $0x18] sm:$0xff] %v1816_v18 }
 0x256   : > { %v1793_v40 = vsub.f32 0.0, %v1777_v52  ;;  %v1691_v34 = vadd.f32 1.4214138, %v1683_v35  ;;  %v1722_v19 = vadd.f32 0.2548296, %v1714_v43 }
 0x257   : > { %v2525_v41 = vpop.eup %2524 }
 0x258   : > { %v1801_v11 = vsel %vm1785_vm15, %v1777_v52, %v1793_v40  ;;  %v1668_v29 = vmul.f32 1.0614054, %v2525_v41  ;;  %v1699_v7 = vmul.f32 %v2521_v22, %v1691_v34  ;;  %v1730_v30 = vmul.f32 %v2519_v27, %v1722_v19  ;;  %v2527_v36 = vpop.eup %2526 }
 0x259   : > { %v1809_v15 = vadd.f32 1.0, %v1801_v11  ;;  %v2529_v37 = vpop.eup %2528 }
 0x25a   : > { %v1676_v49 = vadd.f32 -1.4531521, %v1668_v29  ;;  %v1707_v54 = vadd.f32 -0.28449672, %v1699_v7  ;;  %v1770_v59 = vmul.f32 %v2527_v36, %v1730_v30  ;;  %v2531_v25 = vpop.eup %2530 }
 0x25b   : > { %v1817_v51 = vmul.f32 %v1809_v15, %v1617_v48 }
 0x25c   : > { %v1684_v17 = vmul.f32 %v2525_v41, %v1676_v49  ;;  %v1715_v26 = vmul.f32 %v2521_v22, %v1707_v54  ;;  %v1778_v60 = vsub.f32 1.0, %v1770_v59 }
 0x25d   : > { %1825 = vst [vmem:[%s3217_s8 + $0x20] sm:$0xff] %v1817_v51 }
 0x25e   : > { %v1692_v62 = vadd.f32 1.4214138, %v1684_v17  ;;  %v1723_v20 = vadd.f32 0.2548296, %v1715_v26  ;;  %v1794_v42 = vsub.f32 0.0, %v1778_v60 }
 0x260   : > { %v1700_v10 = vmul.f32 %v2525_v41, %v1692_v62  ;;  %v1731_v27 = vmul.f32 %v2521_v22, %v1723_v20  ;;  %v1802_v12 = vsel %vm1786_vm0, %v1778_v60, %v1794_v42 }
 0x261   : > { %v1810_v6 = vadd.f32 1.0, %v1802_v12 }
 0x262   : > { %v1708_v0 = vadd.f32 -0.28449672, %v1700_v10  ;;  %v1771_v46 = vmul.f32 %v2529_v37, %v1731_v27 }
 0x263   : > { %v1818_v9 = vmul.f32 %v1810_v6, %v1618_v63 }
 0x264   : > { %v1716_v8 = vmul.f32 %v2525_v41, %v1708_v0  ;;  %v1779_v53 = vsub.f32 1.0, %v1771_v46 }
 0x265   : > { %1826 = vst [vmem:[%s3217_s8 + $0x28] sm:$0xff] %v1818_v9 }
 0x266   : > { %v1724_v50 = vadd.f32 0.2548296, %v1716_v8  ;;  %v1795_v47 = vsub.f32 0.0, %v1779_v53 }
 0x268   : > { %v1732_v13 = vmul.f32 %v2525_v41, %v1724_v50  ;;  %v1803_v16 = vsel %vm1787_vm1, %v1779_v53, %v1795_v47 }
 0x269   : > { %v1811_v21 = vadd.f32 1.0, %v1803_v16 }
 0x26a   : > { %v1772_v3 = vmul.f32 %v2531_v25, %v1732_v13 }
 0x26b   : > { %v1819_v22 = vmul.f32 %v1811_v21, %v1619_v45 }
 0x26c   : > { %v1780_v4 = vsub.f32 1.0, %v1772_v3 }
 0x26d   : > { %1827 = vst [vmem:[%s3217_s8 + $0x30] sm:$0xff] %v1819_v22 }
 0x26e   : > { %v1796_v58 = vsub.f32 0.0, %v1780_v4 }
 0x270   : > { %v1804_v31 = vsel %vm1788_vm2, %v1780_v4, %v1796_v58 }
 0x271   : > { %v1812_v18 = vadd.f32 1.0, %v1804_v31 }
 0x273   : > { %v1820_v24 = vmul.f32 %v1812_v18, %v1620_v23 }
 0x275   : > { %1828 = vst [vmem:[%s3217_s8 + $0x38] sm:$0xff] %v1820_v24 }
 0x276 PF: > { %s15_s20 = sadd.s32 1, %s2554_s20   ;;  %s3278_s18 = smov %s2550_s19 }
 0x277   : > { %p12_p5 = scmp.ge.s32.totalorder %s15_s20, 4   ;;  %s3279_s19 = smov %s3281_s21 }
 0x279   :  { %14 = sbr.rel (!%p12_p5) target bundleno = 2 (0x2), region = 71 }

</bundles_post_ra>
